<compile_context>
chip_gen: v6e
topology: v6e:2x2x1
jax: 0.10.0
libtpu: 0.0.40
codegen_flags: <defaults>
</compile_context>

<pallas_src>
import jax
import jax.numpy as jnp
from jax.experimental import pallas as pl
from jax.experimental.pallas import tpu as pltpu

HIDDEN_DIM = 128  # matches `hidden_dim` in the PyTorch module


def _encoder_gru_kernel(x_ref, h0_ref, wih_ref, whh_ref, bih_ref, bhh_ref,
                        out_ref):
    """Fused GRU over the whole sequence.

    x_ref:   (T, H)  bf16   embedded tokens (gathered in the wrapper)
    h0_ref:  (1, H)  f32    initial hidden state
    wih_ref: (H, 3H) bf16   W_ih^T
    whh_ref: (H, 3H) f32    W_hh^T (f32: recurrent path fidelity)
    bih_ref: (1, 3H) f32
    bhh_ref: (1, 3H) f32
    out_ref: (T, H)  f32    per-step GRU outputs
    """
    H = HIDDEN_DIM
    T = out_ref.shape[0]

    # Input-gate path for ALL timesteps: one (T,H)@(H,3H) bf16 MXU matmul,
    # off the recurrence.
    gi_all = jnp.dot(x_ref[...], wih_ref[...],
                     preferred_element_type=jnp.float32) + bih_ref[...]

    whh = whh_ref[...]          # (H, 3H) f32, loaded once
    bhh = bhh_ref[...]          # (1, 3H) f32

    # Recurrence: hidden state carried in vregs, loop fully unrolled (T is
    # static and small).  Only h @ W_hh^T sits on the serial critical path.
    h = h0_ref[...]             # (1, H) f32
    for t in range(T):
        gi = gi_all[t:t + 1, :]                                        # (1, 3H)
        gh = jnp.dot(h, whh, preferred_element_type=jnp.float32) + bhh  # (1, 3H)
        r = jax.nn.sigmoid(gi[:, 0:H] + gh[:, 0:H])
        z = jax.nn.sigmoid(gi[:, H:2 * H] + gh[:, H:2 * H])
        n = jnp.tanh(gi[:, 2 * H:3 * H] + r * gh[:, 2 * H:3 * H])
        h = (1.0 - z) * n + z * h
        out_ref[pl.ds(t, 1), :] = h


def prepare_params(params):
    """One-time parameter prep (hoisted out of the per-call path)."""
    H = HIDDEN_DIM
    return {
        "embedding": params["embedding"].astype(jnp.bfloat16),          # (V, H)
        "w_ih_t": jnp.transpose(params["w_ih"]).astype(jnp.bfloat16),   # (H, 3H)
        "w_hh_t": jnp.transpose(params["w_hh"]).astype(jnp.float32),    # (H, 3H)
        "b_ih": params["b_ih"].reshape(1, 3 * H).astype(jnp.float32),
        "b_hh": params["b_hh"].reshape(1, 3 * H).astype(jnp.float32),
    }


def encoder_rnn_sequence(tokens, hidden, prep):
    """Run the encoder over a whole token sequence in one fused pallas_call.

    tokens: (T,) int32; hidden: (1, 1, H) f32.
    Returns (outputs (T, 1, H), final hidden (1, 1, H)).
    """
    H = HIDDEN_DIM
    T = int(tokens.shape[0])
    tok = jnp.asarray(tokens, jnp.int32).reshape(T)
    h0 = hidden.reshape(1, H).astype(jnp.float32)

    # Embedding gather in the wrapper: removes the table (and its (V,1,H)
    # sublane padding) from VMEM entirely; VMEM footprint is V-independent.
    x_all = jnp.take(prep["embedding"], tok, axis=0)                    # (T, H) bf16

    vmem = pl.BlockSpec(memory_space=pltpu.MemorySpace.VMEM)
    outs = pl.pallas_call(
        _encoder_gru_kernel,
        out_shape=jax.ShapeDtypeStruct((T, H), jnp.float32),
        in_specs=[vmem] * 6,
        out_specs=vmem,
    )(x_all, h0, prep["w_ih_t"], prep["w_hh_t"], prep["b_ih"], prep["b_hh"])

    return outs.reshape(T, 1, H), outs[T - 1].reshape(1, 1, H)


def encoder_rnn_forward(token, hidden, prep):
    """Single-step forward matching the PyTorch signature: (output, hidden)."""
    out, h_new = encoder_rnn_sequence(
        jnp.asarray(token, jnp.int32).reshape(1), hidden, prep)
    return out.reshape(1, 1, HIDDEN_DIM), h_new


def _reference_sequence(tokens, hidden, prep):
    """Pure-JAX reference (mirrors the kernel's bf16 input-path quantization)."""
    H = HIDDEN_DIM
    emb = prep["embedding"].astype(jnp.float32)
    wih = prep["w_ih_t"].astype(jnp.float32)
    whh = prep["w_hh_t"].astype(jnp.float32)
    bih, bhh = prep["b_ih"], prep["b_hh"]
    h = hidden.reshape(1, H).astype(jnp.float32)
    outs = []
    for t in range(int(tokens.shape[0])):
        x = emb[int(tokens[t])].reshape(1, H)
        gi = x @ wih + bih
        gh = h @ whh + bhh
        r = jax.nn.sigmoid(gi[:, 0:H] + gh[:, 0:H])
        z = jax.nn.sigmoid(gi[:, H:2 * H] + gh[:, H:2 * H])
        n = jnp.tanh(gi[:, 2 * H:3 * H] + r * gh[:, 2 * H:3 * H])
        h = (1.0 - z) * n + z * h
        outs.append(h)
    return (jnp.stack(outs, axis=0).reshape(-1, 1, H), h.reshape(1, 1, H))


def init_params(key, input_size):
    """Deterministic synthetic parameters with torch-like uniform init."""
    H = HIDDEN_DIM
    k_emb, k_wih, k_whh, k_bih, k_bhh = jax.random.split(key, 5)
    bound = 1.0 / jnp.sqrt(jnp.float32(H))
    u = lambda k, shape: jax.random.uniform(k, shape, jnp.float32, -bound, bound)
    return {
        "embedding": jax.random.normal(k_emb, (input_size, H), jnp.float32),
        "w_ih": u(k_wih, (3 * H, H)),   # torch weight_ih_l0
        "w_hh": u(k_whh, (3 * H, H)),   # torch weight_hh_l0
        "b_ih": u(k_bih, (3 * H,)),
        "b_hh": u(k_bhh, (3 * H,)),
    }


if __name__ == "__main__":
    key = jax.random.PRNGKey(0)
    k_params, k_tok = jax.random.split(key)

    input_size = 32   # small synthetic vocabulary
    seq_len = 8       # tokens encoded in one fused kernel call

    raw_params = init_params(k_params, input_size)
    prep = prepare_params(raw_params)   # one-time: transpose + dtype cast + reshape

    tokens = jax.random.randint(k_tok, (seq_len,), 0, input_size, dtype=jnp.int32)
    hidden0 = jnp.zeros((1, 1, HIDDEN_DIM), jnp.float32)   # initHidden()

    # Fused whole-sequence encode: one kernel invocation for all T steps.
    outs, h_final = encoder_rnn_sequence(tokens, hidden0, prep)
    outs = jax.block_until_ready(outs)
    h_final = jax.block_until_ready(h_final)

    ref_outs, ref_h = _reference_sequence(tokens, hidden0, prep)
    assert outs.shape == (seq_len, 1, HIDDEN_DIM)
    assert h_final.shape == (1, 1, HIDDEN_DIM)
    assert jnp.allclose(outs, ref_outs, atol=2e-3, rtol=2e-3)
    assert jnp.allclose(h_final, ref_h, atol=2e-3, rtol=2e-3)

    # Single-step path (exact PyTorch `forward(input, hidden)` semantics).
    out1, h1 = encoder_rnn_forward(tokens[0], hidden0, prep)
    out1 = jax.block_until_ready(out1)
    h1 = jax.block_until_ready(h1)
    ref_out1, ref_h1 = _reference_sequence(tokens[:1], hidden0, prep)
    assert jnp.allclose(out1, ref_out1, atol=2e-3, rtol=2e-3)
    assert jnp.allclose(h1, ref_h1, atol=2e-3, rtol=2e-3)

    # TODO(synk): batching B independent sequences ((B,128)@(128,384) per step,
    # batch tiles on a "parallel" grid axis) would fill the 256x256 MXU and use
    # the second v7x TensorCore, but the module semantics are batch=1, so it is
    # not exercised here.
    print("KERNEL_OK")
</pallas_src>

<mosaic_0001>
module attributes {stable_mosaic.version = 11 : i64} {
  func.func @_encoder_gru_kernel(%arg0: memref<8x128xbf16, #tpu.memory_space<vmem>>, %arg1: memref<1x128xf32, #tpu.memory_space<vmem>>, %arg2: memref<128x384xbf16, #tpu.memory_space<vmem>>, %arg3: memref<128x384xf32, #tpu.memory_space<vmem>>, %arg4: memref<1x384xf32, #tpu.memory_space<vmem>>, %arg5: memref<1x384xf32, #tpu.memory_space<vmem>>, %arg6: memref<8x128xf32, #tpu.memory_space<vmem>>) attributes {dimension_semantics = [], scalar_prefetch = 0 : i64, scratch_operands = 0 : i64, tpu.core_type = #tpu.core_type<tc>} {
    %c0 = arith.constant 0 : index
    %c0_0 = arith.constant 0 : index
    %0 = vector.load %arg0[%c0, %c0_0] : memref<8x128xbf16, #tpu.memory_space<vmem>>, vector<8x128xbf16>
    %c0_1 = arith.constant 0 : index
    %c0_2 = arith.constant 0 : index
    %1 = vector.load %arg2[%c0_1, %c0_2] : memref<128x384xbf16, #tpu.memory_space<vmem>>, vector<128x384xbf16>
    %cst = arith.constant dense<0.000000e+00> : vector<8x384xf32>
    %2 = tpu.matmul %0, %1, %cst {dimension_numbers = #tpu.dot_dimension_numbers<[1], [0], [0], [1], [0, 0, 1, 1], [], []>} : vector<8x128xbf16>, vector<128x384xbf16>, vector<8x384xf32> -> vector<8x384xf32>
    %c0_3 = arith.constant 0 : index
    %c0_4 = arith.constant 0 : index
    %3 = vector.load %arg4[%c0_3, %c0_4] : memref<1x384xf32, #tpu.memory_space<vmem>>, vector<1x384xf32>
    %4 = vector.broadcast %3 : vector<1x384xf32> to vector<8x384xf32>
    %5 = arith.addf %2, %4 : vector<8x384xf32>
    %c0_5 = arith.constant 0 : index
    %c0_6 = arith.constant 0 : index
    %6 = vector.load %arg3[%c0_5, %c0_6] : memref<128x384xf32, #tpu.memory_space<vmem>>, vector<128x384xf32>
    %c0_7 = arith.constant 0 : index
    %c0_8 = arith.constant 0 : index
    %7 = vector.load %arg5[%c0_7, %c0_8] : memref<1x384xf32, #tpu.memory_space<vmem>>, vector<1x384xf32>
    %c0_9 = arith.constant 0 : index
    %c0_10 = arith.constant 0 : index
    %8 = vector.load %arg1[%c0_9, %c0_10] : memref<1x128xf32, #tpu.memory_space<vmem>>, vector<1x128xf32>
    %9 = vector.extract_strided_slice %5 {offsets = [0, 0], sizes = [1, 384], strides = [1, 1]} : vector<8x384xf32> to vector<1x384xf32>
    %cst_11 = arith.constant dense<0.000000e+00> : vector<1x384xf32>
    %10 = tpu.matmul %8, %6, %cst_11 {dimension_numbers = #tpu.dot_dimension_numbers<[1], [0], [0], [1], [0, 0, 1, 1], [], []>} : vector<1x128xf32>, vector<128x384xf32>, vector<1x384xf32> -> vector<1x384xf32>
    %11 = arith.addf %10, %7 : vector<1x384xf32>
    %12 = vector.extract_strided_slice %9 {offsets = [0, 0], sizes = [1, 128], strides = [1, 1]} : vector<1x384xf32> to vector<1x128xf32>
    %13 = vector.extract_strided_slice %11 {offsets = [0, 0], sizes = [1, 128], strides = [1, 1]} : vector<1x384xf32> to vector<1x128xf32>
    %14 = arith.addf %12, %13 : vector<1x128xf32>
    %15 = arith.negf %14 : vector<1x128xf32>
    %16 = math.exp %15 : vector<1x128xf32>
    %cst_12 = arith.constant 1.000000e+00 : f32
    %17 = vector.broadcast %cst_12 : f32 to vector<1x128xf32>
    %18 = arith.addf %17, %16 : vector<1x128xf32>
    %19 = arith.divf %17, %18 : vector<1x128xf32>
    %20 = vector.extract_strided_slice %9 {offsets = [0, 128], sizes = [1, 128], strides = [1, 1]} : vector<1x384xf32> to vector<1x128xf32>
    %21 = vector.extract_strided_slice %11 {offsets = [0, 128], sizes = [1, 128], strides = [1, 1]} : vector<1x384xf32> to vector<1x128xf32>
    %22 = arith.addf %20, %21 : vector<1x128xf32>
    %23 = arith.negf %22 : vector<1x128xf32>
    %24 = math.exp %23 : vector<1x128xf32>
    %cst_13 = arith.constant 1.000000e+00 : f32
    %25 = vector.broadcast %cst_13 : f32 to vector<1x128xf32>
    %26 = arith.addf %25, %24 : vector<1x128xf32>
    %27 = arith.divf %25, %26 : vector<1x128xf32>
    %28 = vector.extract_strided_slice %9 {offsets = [0, 256], sizes = [1, 128], strides = [1, 1]} : vector<1x384xf32> to vector<1x128xf32>
    %29 = vector.extract_strided_slice %11 {offsets = [0, 256], sizes = [1, 128], strides = [1, 1]} : vector<1x384xf32> to vector<1x128xf32>
    %30 = arith.mulf %19, %29 : vector<1x128xf32>
    %31 = arith.addf %28, %30 : vector<1x128xf32>
    %32 = math.tanh %31 : vector<1x128xf32>
    %cst_14 = arith.constant 1.000000e+00 : f32
    %33 = vector.broadcast %cst_14 : f32 to vector<1x128xf32>
    %34 = arith.subf %33, %27 : vector<1x128xf32>
    %35 = arith.mulf %34, %32 : vector<1x128xf32>
    %36 = arith.mulf %27, %8 : vector<1x128xf32>
    %37 = arith.addf %35, %36 : vector<1x128xf32>
    %c0_15 = arith.constant 0 : index
    %c0_16 = arith.constant 0 : index
    %38 = vector.load %arg6[%c0_15, %c0_16] : memref<8x128xf32, #tpu.memory_space<vmem>>, vector<1x128xf32>
    tpu.vector_store %arg6[%c0_15, %c0_16], %37 {strides = array<i32>} : memref<8x128xf32, #tpu.memory_space<vmem>>, vector<1x128xf32>,
    %39 = vector.extract_strided_slice %5 {offsets = [1, 0], sizes = [1, 384], strides = [1, 1]} : vector<8x384xf32> to vector<1x384xf32>
    %cst_17 = arith.constant dense<0.000000e+00> : vector<1x384xf32>
    %40 = tpu.matmul %37, %6, %cst_17 {dimension_numbers = #tpu.dot_dimension_numbers<[1], [0], [0], [1], [0, 0, 1, 1], [], []>} : vector<1x128xf32>, vector<128x384xf32>, vector<1x384xf32> -> vector<1x384xf32>
    %41 = arith.addf %40, %7 : vector<1x384xf32>
    %42 = vector.extract_strided_slice %39 {offsets = [0, 0], sizes = [1, 128], strides = [1, 1]} : vector<1x384xf32> to vector<1x128xf32>
    %43 = vector.extract_strided_slice %41 {offsets = [0, 0], sizes = [1, 128], strides = [1, 1]} : vector<1x384xf32> to vector<1x128xf32>
    %44 = arith.addf %42, %43 : vector<1x128xf32>
    %45 = arith.negf %44 : vector<1x128xf32>
    %46 = math.exp %45 : vector<1x128xf32>
    %cst_18 = arith.constant 1.000000e+00 : f32
    %47 = vector.broadcast %cst_18 : f32 to vector<1x128xf32>
    %48 = arith.addf %47, %46 : vector<1x128xf32>
    %49 = arith.divf %47, %48 : vector<1x128xf32>
    %50 = vector.extract_strided_slice %39 {offsets = [0, 128], sizes = [1, 128], strides = [1, 1]} : vector<1x384xf32> to vector<1x128xf32>
    %51 = vector.extract_strided_slice %41 {offsets = [0, 128], sizes = [1, 128], strides = [1, 1]} : vector<1x384xf32> to vector<1x128xf32>
    %52 = arith.addf %50, %51 : vector<1x128xf32>
    %53 = arith.negf %52 : vector<1x128xf32>
    %54 = math.exp %53 : vector<1x128xf32>
    %cst_19 = arith.constant 1.000000e+00 : f32
    %55 = vector.broadcast %cst_19 : f32 to vector<1x128xf32>
    %56 = arith.addf %55, %54 : vector<1x128xf32>
    %57 = arith.divf %55, %56 : vector<1x128xf32>
    %58 = vector.extract_strided_slice %39 {offsets = [0, 256], sizes = [1, 128], strides = [1, 1]} : vector<1x384xf32> to vector<1x128xf32>
    %59 = vector.extract_strided_slice %41 {offsets = [0, 256], sizes = [1, 128], strides = [1, 1]} : vector<1x384xf32> to vector<1x128xf32>
    %60 = arith.mulf %49, %59 : vector<1x128xf32>
    %61 = arith.addf %58, %60 : vector<1x128xf32>
    %62 = math.tanh %61 : vector<1x128xf32>
    %cst_20 = arith.constant 1.000000e+00 : f32
    %63 = vector.broadcast %cst_20 : f32 to vector<1x128xf32>
    %64 = arith.subf %63, %57 : vector<1x128xf32>
    %65 = arith.mulf %64, %62 : vector<1x128xf32>
    %66 = arith.mulf %57, %37 : vector<1x128xf32>
    %67 = arith.addf %65, %66 : vector<1x128xf32>
    %c1 = arith.constant 1 : index
    %c0_21 = arith.constant 0 : index
    %68 = vector.load %arg6[%c1, %c0_21] : memref<8x128xf32, #tpu.memory_space<vmem>>, vector<1x128xf32>
    tpu.vector_store %arg6[%c1, %c0_21], %67 {strides = array<i32>} : memref<8x128xf32, #tpu.memory_space<vmem>>, vector<1x128xf32>,
    %69 = vector.extract_strided_slice %5 {offsets = [2, 0], sizes = [1, 384], strides = [1, 1]} : vector<8x384xf32> to vector<1x384xf32>
    %cst_22 = arith.constant dense<0.000000e+00> : vector<1x384xf32>
    %70 = tpu.matmul %67, %6, %cst_22 {dimension_numbers = #tpu.dot_dimension_numbers<[1], [0], [0], [1], [0, 0, 1, 1], [], []>} : vector<1x128xf32>, vector<128x384xf32>, vector<1x384xf32> -> vector<1x384xf32>
    %71 = arith.addf %70, %7 : vector<1x384xf32>
    %72 = vector.extract_strided_slice %69 {offsets = [0, 0], sizes = [1, 128], strides = [1, 1]} : vector<1x384xf32> to vector<1x128xf32>
    %73 = vector.extract_strided_slice %71 {offsets = [0, 0], sizes = [1, 128], strides = [1, 1]} : vector<1x384xf32> to vector<1x128xf32>
    %74 = arith.addf %72, %73 : vector<1x128xf32>
    %75 = arith.negf %74 : vector<1x128xf32>
    %76 = math.exp %75 : vector<1x128xf32>
    %cst_23 = arith.constant 1.000000e+00 : f32
    %77 = vector.broadcast %cst_23 : f32 to vector<1x128xf32>
    %78 = arith.addf %77, %76 : vector<1x128xf32>
    %79 = arith.divf %77, %78 : vector<1x128xf32>
    %80 = vector.extract_strided_slice %69 {offsets = [0, 128], sizes = [1, 128], strides = [1, 1]} : vector<1x384xf32> to vector<1x128xf32>
    %81 = vector.extract_strided_slice %71 {offsets = [0, 128], sizes = [1, 128], strides = [1, 1]} : vector<1x384xf32> to vector<1x128xf32>
    %82 = arith.addf %80, %81 : vector<1x128xf32>
    %83 = arith.negf %82 : vector<1x128xf32>
    %84 = math.exp %83 : vector<1x128xf32>
    %cst_24 = arith.constant 1.000000e+00 : f32
    %85 = vector.broadcast %cst_24 : f32 to vector<1x128xf32>
    %86 = arith.addf %85, %84 : vector<1x128xf32>
    %87 = arith.divf %85, %86 : vector<1x128xf32>
    %88 = vector.extract_strided_slice %69 {offsets = [0, 256], sizes = [1, 128], strides = [1, 1]} : vector<1x384xf32> to vector<1x128xf32>
    %89 = vector.extract_strided_slice %71 {offsets = [0, 256], sizes = [1, 128], strides = [1, 1]} : vector<1x384xf32> to vector<1x128xf32>
    %90 = arith.mulf %79, %89 : vector<1x128xf32>
    %91 = arith.addf %88, %90 : vector<1x128xf32>
    %92 = math.tanh %91 : vector<1x128xf32>
    %cst_25 = arith.constant 1.000000e+00 : f32
    %93 = vector.broadcast %cst_25 : f32 to vector<1x128xf32>
    %94 = arith.subf %93, %87 : vector<1x128xf32>
    %95 = arith.mulf %94, %92 : vector<1x128xf32>
    %96 = arith.mulf %87, %67 : vector<1x128xf32>
    %97 = arith.addf %95, %96 : vector<1x128xf32>
    %c2 = arith.constant 2 : index
    %c0_26 = arith.constant 0 : index
    %98 = vector.load %arg6[%c2, %c0_26] : memref<8x128xf32, #tpu.memory_space<vmem>>, vector<1x128xf32>
    tpu.vector_store %arg6[%c2, %c0_26], %97 {strides = array<i32>} : memref<8x128xf32, #tpu.memory_space<vmem>>, vector<1x128xf32>,
    %99 = vector.extract_strided_slice %5 {offsets = [3, 0], sizes = [1, 384], strides = [1, 1]} : vector<8x384xf32> to vector<1x384xf32>
    %cst_27 = arith.constant dense<0.000000e+00> : vector<1x384xf32>
    %100 = tpu.matmul %97, %6, %cst_27 {dimension_numbers = #tpu.dot_dimension_numbers<[1], [0], [0], [1], [0, 0, 1, 1], [], []>} : vector<1x128xf32>, vector<128x384xf32>, vector<1x384xf32> -> vector<1x384xf32>
    %101 = arith.addf %100, %7 : vector<1x384xf32>
    %102 = vector.extract_strided_slice %99 {offsets = [0, 0], sizes = [1, 128], strides = [1, 1]} : vector<1x384xf32> to vector<1x128xf32>
    %103 = vector.extract_strided_slice %101 {offsets = [0, 0], sizes = [1, 128], strides = [1, 1]} : vector<1x384xf32> to vector<1x128xf32>
    %104 = arith.addf %102, %103 : vector<1x128xf32>
    %105 = arith.negf %104 : vector<1x128xf32>
    %106 = math.exp %105 : vector<1x128xf32>
    %cst_28 = arith.constant 1.000000e+00 : f32
    %107 = vector.broadcast %cst_28 : f32 to vector<1x128xf32>
    %108 = arith.addf %107, %106 : vector<1x128xf32>
    %109 = arith.divf %107, %108 : vector<1x128xf32>
    %110 = vector.extract_strided_slice %99 {offsets = [0, 128], sizes = [1, 128], strides = [1, 1]} : vector<1x384xf32> to vector<1x128xf32>
    %111 = vector.extract_strided_slice %101 {offsets = [0, 128], sizes = [1, 128], strides = [1, 1]} : vector<1x384xf32> to vector<1x128xf32>
    %112 = arith.addf %110, %111 : vector<1x128xf32>
    %113 = arith.negf %112 : vector<1x128xf32>
    %114 = math.exp %113 : vector<1x128xf32>
    %cst_29 = arith.constant 1.000000e+00 : f32
    %115 = vector.broadcast %cst_29 : f32 to vector<1x128xf32>
    %116 = arith.addf %115, %114 : vector<1x128xf32>
    %117 = arith.divf %115, %116 : vector<1x128xf32>
    %118 = vector.extract_strided_slice %99 {offsets = [0, 256], sizes = [1, 128], strides = [1, 1]} : vector<1x384xf32> to vector<1x128xf32>
    %119 = vector.extract_strided_slice %101 {offsets = [0, 256], sizes = [1, 128], strides = [1, 1]} : vector<1x384xf32> to vector<1x128xf32>
    %120 = arith.mulf %109, %119 : vector<1x128xf32>
    %121 = arith.addf %118, %120 : vector<1x128xf32>
    %122 = math.tanh %121 : vector<1x128xf32>
    %cst_30 = arith.constant 1.000000e+00 : f32
    %123 = vector.broadcast %cst_30 : f32 to vector<1x128xf32>
    %124 = arith.subf %123, %117 : vector<1x128xf32>
    %125 = arith.mulf %124, %122 : vector<1x128xf32>
    %126 = arith.mulf %117, %97 : vector<1x128xf32>
    %127 = arith.addf %125, %126 : vector<1x128xf32>
    %c3 = arith.constant 3 : index
    %c0_31 = arith.constant 0 : index
    %128 = vector.load %arg6[%c3, %c0_31] : memref<8x128xf32, #tpu.memory_space<vmem>>, vector<1x128xf32>
    tpu.vector_store %arg6[%c3, %c0_31], %127 {strides = array<i32>} : memref<8x128xf32, #tpu.memory_space<vmem>>, vector<1x128xf32>,
    %129 = vector.extract_strided_slice %5 {offsets = [4, 0], sizes = [1, 384], strides = [1, 1]} : vector<8x384xf32> to vector<1x384xf32>
    %cst_32 = arith.constant dense<0.000000e+00> : vector<1x384xf32>
    %130 = tpu.matmul %127, %6, %cst_32 {dimension_numbers = #tpu.dot_dimension_numbers<[1], [0], [0], [1], [0, 0, 1, 1], [], []>} : vector<1x128xf32>, vector<128x384xf32>, vector<1x384xf32> -> vector<1x384xf32>
    %131 = arith.addf %130, %7 : vector<1x384xf32>
    %132 = vector.extract_strided_slice %129 {offsets = [0, 0], sizes = [1, 128], strides = [1, 1]} : vector<1x384xf32> to vector<1x128xf32>
    %133 = vector.extract_strided_slice %131 {offsets = [0, 0], sizes = [1, 128], strides = [1, 1]} : vector<1x384xf32> to vector<1x128xf32>
    %134 = arith.addf %132, %133 : vector<1x128xf32>
    %135 = arith.negf %134 : vector<1x128xf32>
    %136 = math.exp %135 : vector<1x128xf32>
    %cst_33 = arith.constant 1.000000e+00 : f32
    %137 = vector.broadcast %cst_33 : f32 to vector<1x128xf32>
    %138 = arith.addf %137, %136 : vector<1x128xf32>
    %139 = arith.divf %137, %138 : vector<1x128xf32>
    %140 = vector.extract_strided_slice %129 {offsets = [0, 128], sizes = [1, 128], strides = [1, 1]} : vector<1x384xf32> to vector<1x128xf32>
    %141 = vector.extract_strided_slice %131 {offsets = [0, 128], sizes = [1, 128], strides = [1, 1]} : vector<1x384xf32> to vector<1x128xf32>
    %142 = arith.addf %140, %141 : vector<1x128xf32>
    %143 = arith.negf %142 : vector<1x128xf32>
    %144 = math.exp %143 : vector<1x128xf32>
    %cst_34 = arith.constant 1.000000e+00 : f32
    %145 = vector.broadcast %cst_34 : f32 to vector<1x128xf32>
    %146 = arith.addf %145, %144 : vector<1x128xf32>
    %147 = arith.divf %145, %146 : vector<1x128xf32>
    %148 = vector.extract_strided_slice %129 {offsets = [0, 256], sizes = [1, 128], strides = [1, 1]} : vector<1x384xf32> to vector<1x128xf32>
    %149 = vector.extract_strided_slice %131 {offsets = [0, 256], sizes = [1, 128], strides = [1, 1]} : vector<1x384xf32> to vector<1x128xf32>
    %150 = arith.mulf %139, %149 : vector<1x128xf32>
    %151 = arith.addf %148, %150 : vector<1x128xf32>
    %152 = math.tanh %151 : vector<1x128xf32>
    %cst_35 = arith.constant 1.000000e+00 : f32
    %153 = vector.broadcast %cst_35 : f32 to vector<1x128xf32>
    %154 = arith.subf %153, %147 : vector<1x128xf32>
    %155 = arith.mulf %154, %152 : vector<1x128xf32>
    %156 = arith.mulf %147, %127 : vector<1x128xf32>
    %157 = arith.addf %155, %156 : vector<1x128xf32>
    %c4 = arith.constant 4 : index
    %c0_36 = arith.constant 0 : index
    %158 = vector.load %arg6[%c4, %c0_36] : memref<8x128xf32, #tpu.memory_space<vmem>>, vector<1x128xf32>
    tpu.vector_store %arg6[%c4, %c0_36], %157 {strides = array<i32>} : memref<8x128xf32, #tpu.memory_space<vmem>>, vector<1x128xf32>,
    %159 = vector.extract_strided_slice %5 {offsets = [5, 0], sizes = [1, 384], strides = [1, 1]} : vector<8x384xf32> to vector<1x384xf32>
    %cst_37 = arith.constant dense<0.000000e+00> : vector<1x384xf32>
    %160 = tpu.matmul %157, %6, %cst_37 {dimension_numbers = #tpu.dot_dimension_numbers<[1], [0], [0], [1], [0, 0, 1, 1], [], []>} : vector<1x128xf32>, vector<128x384xf32>, vector<1x384xf32> -> vector<1x384xf32>
    %161 = arith.addf %160, %7 : vector<1x384xf32>
    %162 = vector.extract_strided_slice %159 {offsets = [0, 0], sizes = [1, 128], strides = [1, 1]} : vector<1x384xf32> to vector<1x128xf32>
    %163 = vector.extract_strided_slice %161 {offsets = [0, 0], sizes = [1, 128], strides = [1, 1]} : vector<1x384xf32> to vector<1x128xf32>
    %164 = arith.addf %162, %163 : vector<1x128xf32>
    %165 = arith.negf %164 : vector<1x128xf32>
    %166 = math.exp %165 : vector<1x128xf32>
    %cst_38 = arith.constant 1.000000e+00 : f32
    %167 = vector.broadcast %cst_38 : f32 to vector<1x128xf32>
    %168 = arith.addf %167, %166 : vector<1x128xf32>
    %169 = arith.divf %167, %168 : vector<1x128xf32>
    %170 = vector.extract_strided_slice %159 {offsets = [0, 128], sizes = [1, 128], strides = [1, 1]} : vector<1x384xf32> to vector<1x128xf32>
    %171 = vector.extract_strided_slice %161 {offsets = [0, 128], sizes = [1, 128], strides = [1, 1]} : vector<1x384xf32> to vector<1x128xf32>
    %172 = arith.addf %170, %171 : vector<1x128xf32>
    %173 = arith.negf %172 : vector<1x128xf32>
    %174 = math.exp %173 : vector<1x128xf32>
    %cst_39 = arith.constant 1.000000e+00 : f32
    %175 = vector.broadcast %cst_39 : f32 to vector<1x128xf32>
    %176 = arith.addf %175, %174 : vector<1x128xf32>
    %177 = arith.divf %175, %176 : vector<1x128xf32>
    %178 = vector.extract_strided_slice %159 {offsets = [0, 256], sizes = [1, 128], strides = [1, 1]} : vector<1x384xf32> to vector<1x128xf32>
    %179 = vector.extract_strided_slice %161 {offsets = [0, 256], sizes = [1, 128], strides = [1, 1]} : vector<1x384xf32> to vector<1x128xf32>
    %180 = arith.mulf %169, %179 : vector<1x128xf32>
    %181 = arith.addf %178, %180 : vector<1x128xf32>
    %182 = math.tanh %181 : vector<1x128xf32>
    %cst_40 = arith.constant 1.000000e+00 : f32
    %183 = vector.broadcast %cst_40 : f32 to vector<1x128xf32>
    %184 = arith.subf %183, %177 : vector<1x128xf32>
    %185 = arith.mulf %184, %182 : vector<1x128xf32>
    %186 = arith.mulf %177, %157 : vector<1x128xf32>
    %187 = arith.addf %185, %186 : vector<1x128xf32>
    %c5 = arith.constant 5 : index
    %c0_41 = arith.constant 0 : index
    %188 = vector.load %arg6[%c5, %c0_41] : memref<8x128xf32, #tpu.memory_space<vmem>>, vector<1x128xf32>
    tpu.vector_store %arg6[%c5, %c0_41], %187 {strides = array<i32>} : memref<8x128xf32, #tpu.memory_space<vmem>>, vector<1x128xf32>,
    %189 = vector.extract_strided_slice %5 {offsets = [6, 0], sizes = [1, 384], strides = [1, 1]} : vector<8x384xf32> to vector<1x384xf32>
    %cst_42 = arith.constant dense<0.000000e+00> : vector<1x384xf32>
    %190 = tpu.matmul %187, %6, %cst_42 {dimension_numbers = #tpu.dot_dimension_numbers<[1], [0], [0], [1], [0, 0, 1, 1], [], []>} : vector<1x128xf32>, vector<128x384xf32>, vector<1x384xf32> -> vector<1x384xf32>
    %191 = arith.addf %190, %7 : vector<1x384xf32>
    %192 = vector.extract_strided_slice %189 {offsets = [0, 0], sizes = [1, 128], strides = [1, 1]} : vector<1x384xf32> to vector<1x128xf32>
    %193 = vector.extract_strided_slice %191 {offsets = [0, 0], sizes = [1, 128], strides = [1, 1]} : vector<1x384xf32> to vector<1x128xf32>
    %194 = arith.addf %192, %193 : vector<1x128xf32>
    %195 = arith.negf %194 : vector<1x128xf32>
    %196 = math.exp %195 : vector<1x128xf32>
    %cst_43 = arith.constant 1.000000e+00 : f32
    %197 = vector.broadcast %cst_43 : f32 to vector<1x128xf32>
    %198 = arith.addf %197, %196 : vector<1x128xf32>
    %199 = arith.divf %197, %198 : vector<1x128xf32>
    %200 = vector.extract_strided_slice %189 {offsets = [0, 128], sizes = [1, 128], strides = [1, 1]} : vector<1x384xf32> to vector<1x128xf32>
    %201 = vector.extract_strided_slice %191 {offsets = [0, 128], sizes = [1, 128], strides = [1, 1]} : vector<1x384xf32> to vector<1x128xf32>
    %202 = arith.addf %200, %201 : vector<1x128xf32>
    %203 = arith.negf %202 : vector<1x128xf32>
    %204 = math.exp %203 : vector<1x128xf32>
    %cst_44 = arith.constant 1.000000e+00 : f32
    %205 = vector.broadcast %cst_44 : f32 to vector<1x128xf32>
    %206 = arith.addf %205, %204 : vector<1x128xf32>
    %207 = arith.divf %205, %206 : vector<1x128xf32>
    %208 = vector.extract_strided_slice %189 {offsets = [0, 256], sizes = [1, 128], strides = [1, 1]} : vector<1x384xf32> to vector<1x128xf32>
    %209 = vector.extract_strided_slice %191 {offsets = [0, 256], sizes = [1, 128], strides = [1, 1]} : vector<1x384xf32> to vector<1x128xf32>
    %210 = arith.mulf %199, %209 : vector<1x128xf32>
    %211 = arith.addf %208, %210 : vector<1x128xf32>
    %212 = math.tanh %211 : vector<1x128xf32>
    %cst_45 = arith.constant 1.000000e+00 : f32
    %213 = vector.broadcast %cst_45 : f32 to vector<1x128xf32>
    %214 = arith.subf %213, %207 : vector<1x128xf32>
    %215 = arith.mulf %214, %212 : vector<1x128xf32>
    %216 = arith.mulf %207, %187 : vector<1x128xf32>
    %217 = arith.addf %215, %216 : vector<1x128xf32>
    %c6 = arith.constant 6 : index
    %c0_46 = arith.constant 0 : index
    %218 = vector.load %arg6[%c6, %c0_46] : memref<8x128xf32, #tpu.memory_space<vmem>>, vector<1x128xf32>
    tpu.vector_store %arg6[%c6, %c0_46], %217 {strides = array<i32>} : memref<8x128xf32, #tpu.memory_space<vmem>>, vector<1x128xf32>,
    %219 = vector.extract_strided_slice %5 {offsets = [7, 0], sizes = [1, 384], strides = [1, 1]} : vector<8x384xf32> to vector<1x384xf32>
    %cst_47 = arith.constant dense<0.000000e+00> : vector<1x384xf32>
    %220 = tpu.matmul %217, %6, %cst_47 {dimension_numbers = #tpu.dot_dimension_numbers<[1], [0], [0], [1], [0, 0, 1, 1], [], []>} : vector<1x128xf32>, vector<128x384xf32>, vector<1x384xf32> -> vector<1x384xf32>
    %221 = arith.addf %220, %7 : vector<1x384xf32>
    %222 = vector.extract_strided_slice %219 {offsets = [0, 0], sizes = [1, 128], strides = [1, 1]} : vector<1x384xf32> to vector<1x128xf32>
    %223 = vector.extract_strided_slice %221 {offsets = [0, 0], sizes = [1, 128], strides = [1, 1]} : vector<1x384xf32> to vector<1x128xf32>
    %224 = arith.addf %222, %223 : vector<1x128xf32>
    %225 = arith.negf %224 : vector<1x128xf32>
    %226 = math.exp %225 : vector<1x128xf32>
    %cst_48 = arith.constant 1.000000e+00 : f32
    %227 = vector.broadcast %cst_48 : f32 to vector<1x128xf32>
    %228 = arith.addf %227, %226 : vector<1x128xf32>
    %229 = arith.divf %227, %228 : vector<1x128xf32>
    %230 = vector.extract_strided_slice %219 {offsets = [0, 128], sizes = [1, 128], strides = [1, 1]} : vector<1x384xf32> to vector<1x128xf32>
    %231 = vector.extract_strided_slice %221 {offsets = [0, 128], sizes = [1, 128], strides = [1, 1]} : vector<1x384xf32> to vector<1x128xf32>
    %232 = arith.addf %230, %231 : vector<1x128xf32>
    %233 = arith.negf %232 : vector<1x128xf32>
    %234 = math.exp %233 : vector<1x128xf32>
    %cst_49 = arith.constant 1.000000e+00 : f32
    %235 = vector.broadcast %cst_49 : f32 to vector<1x128xf32>
    %236 = arith.addf %235, %234 : vector<1x128xf32>
    %237 = arith.divf %235, %236 : vector<1x128xf32>
    %238 = vector.extract_strided_slice %219 {offsets = [0, 256], sizes = [1, 128], strides = [1, 1]} : vector<1x384xf32> to vector<1x128xf32>
    %239 = vector.extract_strided_slice %221 {offsets = [0, 256], sizes = [1, 128], strides = [1, 1]} : vector<1x384xf32> to vector<1x128xf32>
    %240 = arith.mulf %229, %239 : vector<1x128xf32>
    %241 = arith.addf %238, %240 : vector<1x128xf32>
    %242 = math.tanh %241 : vector<1x128xf32>
    %cst_50 = arith.constant 1.000000e+00 : f32
    %243 = vector.broadcast %cst_50 : f32 to vector<1x128xf32>
    %244 = arith.subf %243, %237 : vector<1x128xf32>
    %245 = arith.mulf %244, %242 : vector<1x128xf32>
    %246 = arith.mulf %237, %217 : vector<1x128xf32>
    %247 = arith.addf %245, %246 : vector<1x128xf32>
    %c7 = arith.constant 7 : index
    %c0_51 = arith.constant 0 : index
    %248 = vector.load %arg6[%c7, %c0_51] : memref<8x128xf32, #tpu.memory_space<vmem>>, vector<1x128xf32>
    tpu.vector_store %arg6[%c7, %c0_51], %247 {strides = array<i32>} : memref<8x128xf32, #tpu.memory_space<vmem>>, vector<1x128xf32>,
    return
  }
}

</mosaic_0001>

<bundles_post_ra>
// kernel: tpu_custom_call.1
= control target key start
LH: loop header
LB: loop body
LE: loop exit
PB: predicated region body
PF: predicated region fallthrough
CT: control target
= control target key end

     0   :  { %11 = vsyncpa [#allocation3], 0  ;;  %s3448_s0 = inlined_call_operand.hbm [shape: bf16[8,128], index: 0, kind: input, shape index: {}]   ;;  %s3449_s1 = inlined_call_operand.vmem [shape: f32[1,128], index: 1, kind: input, shape index: {}]   ;;  %s3450_s2 = inlined_call_operand.hbm [shape: bf16[128,384], index: 2, kind: input, shape index: {}]   ;;  %s3451_s3 = inlined_call_operand.hbm [shape: f32[128,384], index: 3, kind: input, shape index: {}]   ;;  %s3452_s4 = inlined_call_operand.vmem [shape: f32[1,384], index: 4, kind: input, shape index: {}]   ;;  %s3453_s5 = inlined_call_operand.vmem [shape: f32[1,384], index: 5, kind: input, shape index: {}]   ;;  %s3454_s6 = inlined_call_operand.hbm [shape: f32[8,128], index: 6, kind: output, shape index: {}]  }
   0x1   :  { %12 = vsyncpa [#allocation6], 0 }
   0x2   :  { %13 = vsyncpa [#allocation4], 0  ;;  %s2547_s21 = smov [#allocation5]  }
   0x3   :  { %s31_s22 = sshll.u32 %s2547_s21, 4  ;;  %s32_s22 = int_to_ptr.vmem [resolvable:$true] %s31_s22 }
   0x4   :  { %s2469_s23 = scalar_lea.vmem %s32_s22, 3072  ;;  %p2474_p1 = scmp.lt.s32.totalorder %s32_s22, %s32_s22 }
   0x5   :  { %p2470_p0 = scmp.ne.s32.totalorder %s32_s22, %s2469_s23  ;;  %p2475_p2 = scmp.lt.s32.totalorder %s2469_s23, %s2469_s23 }
   0x7   :  { %p2476_p3 = por %p2475_p2, %p2474_p1 }
   0x9   :  { %p2477_p4 = pnand %p2476_p3, %p2470_p0 }
   0xb   :  { %2480 = shalt.err (!%p2477_p4)
}
   0xc   :  { %s2548_s24 = smov 192   ;;  %s2549_s25 = smov 12  }
   0xd   :  { %37 = dma.hbm_to_vmem [thread:$0]  %s3450_s2, 3072, %s32_s22, [#allocation6], %s2548_s24, %s2548_s24, %s2549_s25  }
   0xe   :  { %s2550_s28 = smov [#allocation2]   ;;  %s2551_s30 = smov [#allocation7]  }
   0xf   :  { %s20_s29 = sshll.u32 %s2550_s28, 4  ;;  %s43_s7 = sshll.u32 %s2551_s30, 4  ;;  %s21_s29 = int_to_ptr.vmem [resolvable:$true] %s20_s29  ;;  %s44_s7 = int_to_ptr.vmem [resolvable:$true] %s43_s7 }
  0x10   :  { %s2489_s8 = scalar_lea.vmem %s21_s29, 64  ;;  %p2494_p6 = scmp.lt.s32.totalorder %s21_s29, %s21_s29 }
  0x11   :  { %p2490_p5 = scmp.ne.s32.totalorder %s21_s29, %s2489_s8  ;;  %p2495_p7 = scmp.lt.s32.totalorder %s2489_s8, %s2489_s8 }
  0x13   :  { %p2496_p8 = por %p2495_p7, %p2494_p6 }
  0x15   :  { %p2497_p9 = pnand %p2496_p8, %p2490_p5 }
  0x17   :  { %2500 = shalt.err (!%p2497_p9)
}
  0x18   :  { %23 = dma.hbm_to_vmem [thread:$0]  %s3448_s0, 64, %s21_s29, [#allocation3]  }
  0x19   :  { %s2509_s11 = scalar_lea.vmem %s44_s7, 6144  ;;  %p2514_p11 = scmp.lt.s32.totalorder %s44_s7, %s44_s7 }
  0x1a   :  { %p2510_p10 = scmp.ne.s32.totalorder %s44_s7, %s2509_s11  ;;  %p2515_p12 = scmp.lt.s32.totalorder %s2509_s11, %s2509_s11 }
  0x1c   :  { %p2516_p13 = por %p2515_p12, %p2514_p11 }
  0x1e   :  { %p2517_p0 = pnand %p2516_p13, %p2510_p10 }
  0x20   :  { %2520 = shalt.err (!%p2517_p0)
}
  0x21   :  { %s2552_s2 = smov 384   ;;  %s2553_s12 = smov 24  }
  0x22   :  { %49 = dma.hbm_to_vmem [thread:$0]  %s3451_s3, 6144, %s44_s7, [#allocation6], %s2552_s2, %s2552_s2, %s2553_s12  }
  0x23   :  { %2541 = dma.done.wait [#allocation3], 64  }
  0x24   :  { %2542 = vsyncadd [#allocation3], 4294967232 }
  0x25   :  { %2543 = dma.done.wait [#allocation6], 9216  }
  0x26   :  { %2544 = vsyncadd [#allocation6], 4294958080  ;;  %v3455_v0 = vmov 0.0   ;;  %v2555_v1 = vmov 0   ;;  %vm2556_vm0 = vmmov 0   ;;  %v2609_v23 = vld [vmem:[#allocation7 + $0x170] sm:$0xff] }
  0x27   :  { %1990 = vmatprep.subr.bf16.mxu1 %v3455_v0  ;;  %274 = vmatprep.mubr.bf16.mxu0 %v2555_v1  ;;  %v2301_v2 = vld [vmem:[#allocation5 + $0xac] ss:$12 sps:$4 sm:$0xff]   ;;  %v2303_v3 = vld [vmem:[#allocation5 + $0xa8] ss:$12 sps:$4 sm:$0xff]   ;;  %v2306_v5 = vld [vmem:[#allocation5 + $0x90] ss:$12 sps:$4 sm:$0xff]  }
  0x28   :  { %2006 = vmatprep.mubr.msk.bf16.mxu1 %vm2556_vm0, %v3455_v0  ;;  %242 = vmatprep.subr.bf16.mxu0 %v2301_v2  ;;  %v2304_v4 = vld [vmem:[#allocation5 + $0x94] ss:$12 sps:$4 sm:$0xff]   ;;  %v2307_v6 = vld [vmem:[#allocation5 + $0x7c] ss:$12 sps:$4 sm:$0xff]   ;;  %v2309_v7 = vld [vmem:[#allocation5 + $0x78] ss:$12 sps:$4 sm:$0xff]  }
  0x29   :  { %243 = vmatpush1.bf16.msra.mxu0 %v2303_v3  ;;  %v2310_v8 = vld [vmem:[#allocation5 + $0x64] ss:$12 sps:$4 sm:$0xff]   ;;  %v2312_v9 = vld [vmem:[#allocation5 + $0x60] ss:$12 sps:$4 sm:$0xff]   ;;  %v2315_v13 = vld [vmem:[#allocation5 + $0x48] ss:$12 sps:$4 sm:$0xff]  }
  0x2a   :  { %244 = vmatprep.subr.bf16.mxu0 %v2304_v4  ;;  %v2325_v10 = vld [vmem:[#allocation5 + $0xb0] ss:$12 sps:$4 sm:$0xff]   ;;  %v2313_v11 = vld [vmem:[#allocation5 + $0x4c] ss:$12 sps:$4 sm:$0xff]   ;;  %v2316_v14 = vld [vmem:[#allocation5 + $0x34] ss:$12 sps:$4 sm:$0xff]  }
  0x2b   :  { %1991 = vmatpush3.bf16.msra.mxu1 %v2325_v10  ;;  %v2326_v12 = vld [vmem:[#allocation5 + $0x98] ss:$12 sps:$4 sm:$0xff]   ;;  %v2327_v15 = vld [vmem:[#allocation5 + $0x80] ss:$12 sps:$4 sm:$0xff]   ;;  %v2318_v16 = vld [vmem:[#allocation5 + $0x30] ss:$12 sps:$4 sm:$0xff]  }
  0x2c   :  { %1992 = vmatprep.subr.bf16.mxu1 %v3455_v0  ;;  %v2319_v17 = vld [vmem:[#allocation5 + $0x1c] ss:$12 sps:$4 sm:$0xff]   ;;  %v2321_v19 = vld [vmem:[#allocation5 + $0x18] ss:$12 sps:$4 sm:$0xff]   ;;  %v2324_v22 = vld [vmem:[#allocation5] ss:$12 sps:$4 sm:$0xff]  }
  0x2d   :  { %245 = vmatpush1.bf16.msra.mxu0 %v2306_v5  ;;  %v2328_v18 = vld [vmem:[#allocation5 + $0x68] ss:$12 sps:$4 sm:$0xff]   ;;  %v2322_v20 = vld [vmem:[#allocation5 + $0x4] ss:$12 sps:$4 sm:$0xff]   ;;  %3483 = vst [vmem:[#allocation12_spill] sm:$0xff] %v2609_v23  ;;  %v2615_v27 = vld [vmem:[#allocation7 + $0x158] sm:$0xff] }
  0x2e   :  { %246 = vmatprep.subr.bf16.mxu0 %v2307_v6  ;;  %v2329_v21 = vld [vmem:[#allocation5 + $0x50] ss:$12 sps:$4 sm:$0xff]   ;;  %v2330_v24 = vld [vmem:[#allocation5 + $0x38] ss:$12 sps:$4 sm:$0xff]   ;;  %v2613_v26 = vld [vmem:[#allocation7 + $0x168] sm:$0xff] }
  0x2f   :  { %1993 = vmatpush3.bf16.msra.mxu1 %v2326_v12  ;;  %v64_v25 = vld [vmem:[#allocation2] sm:$0xf]  ;;  %v2331_v28 = vld [vmem:[#allocation5 + $0x20] ss:$12 sps:$4 sm:$0xff]   ;;  %v2617_v29 = vld [vmem:[#allocation7 + $0x150] sm:$0xff] }
  0x30   :  { %1994 = vmatprep.subr.bf16.mxu1 %v3455_v0  ;;  %v2621_v30 = vld [vmem:[#allocation7 + $0x140] sm:$0xff]  ;;  %v2625_v31 = vld [vmem:[#allocation7 + $0x138] sm:$0xff]  ;;  %v2628_v32 = vld [vmem:[#allocation7 + $0x128] sm:$0xff] }
  0x31   :  { %247 = vmatpush1.bf16.msra.mxu0 %v2309_v7  ;;  %v2332_v33 = vld [vmem:[#allocation5 + $0x8] ss:$12 sps:$4 sm:$0xff]   ;;  %v2631_v34 = vld [vmem:[#allocation7 + $0x120] sm:$0xff]  ;;  %v2641_v37 = vld [vmem:[#allocation7 + $0xf8] sm:$0xff] }
  0x32   :  { %248 = vmatprep.subr.bf16.mxu0 %v2310_v8  ;;  %v2635_v35 = vld [vmem:[#allocation7 + $0x110] sm:$0xff]  ;;  %v2638_v36 = vld [vmem:[#allocation7 + $0x108] sm:$0xff]  ;;  %v2647_v39 = vld [vmem:[#allocation7 + $0x178] sm:$0xff] }
  0x33   :  { %1995 = vmatpush3.bf16.msra.mxu1 %v2327_v15  ;;  %v2644_v38 = vld [vmem:[#allocation7 + $0xf0] sm:$0xff]  ;;  %v2650_v40 = vld [vmem:[#allocation7 + $0xe0] sm:$0xff]  ;;  %v2653_v41 = vld [vmem:[#allocation7 + $0xd8] sm:$0xff] }
  0x34   :  { %1996 = vmatprep.subr.bf16.mxu1 %v3455_v0  ;;  %v2655_v42 = vld [vmem:[#allocation7 + $0x160] sm:$0xff]  ;;  %v2658_v43 = vld [vmem:[#allocation7 + $0xc8] sm:$0xff]  ;;  %v2668_v46 = vld [vmem:[#allocation7 + $0xb0] sm:$0xff] }
  0x35   :  { %249 = vmatpush1.bf16.msra.mxu0 %v2312_v9  ;;  %v2662_v44 = vld [vmem:[#allocation7 + $0xc0] sm:$0xff]  ;;  %v2665_v45 = vld [vmem:[#allocation7 + $0x148] sm:$0xff]  ;;  %v2675_v48 = vld [vmem:[#allocation7 + $0x130] sm:$0xff] }
  0x36   :  { %250 = vmatprep.subr.bf16.mxu0 %v2313_v11  ;;  %v2672_v47 = vld [vmem:[#allocation7 + $0xa8] sm:$0xff]  ;;  %v2678_v49 = vld [vmem:[#allocation7 + $0x98] sm:$0xff]  ;;  %v2682_v50 = vld [vmem:[#allocation7 + $0x90] sm:$0xff] }
  0x37   :  { %1997 = vmatpush3.bf16.msra.mxu1 %v2328_v18  ;;  %v2685_v51 = vld [vmem:[#allocation7 + $0x118] sm:$0xff]  ;;  %v2688_v52 = vld [vmem:[#allocation7 + $0x80] sm:$0xff]  ;;  %v2698_v55 = vld [vmem:[#allocation7 + $0x68] sm:$0xff] }
  0x38   :  { %1998 = vmatprep.subr.bf16.mxu1 %v3455_v0  ;;  %v2692_v53 = vld [vmem:[#allocation7 + $0x78] sm:$0xff]  ;;  %v2695_v54 = vld [vmem:[#allocation7 + $0x100] sm:$0xff]  ;;  %v2705_v57 = vld [vmem:[#allocation7 + $0xe8] sm:$0xff] }
  0x39   :  { %251 = vmatpush1.bf16.msra.mxu0 %v2315_v13  ;;  %v2702_v56 = vld [vmem:[#allocation7 + $0x60] sm:$0xff]  ;;  %v2708_v58 = vld [vmem:[#allocation7 + $0x50] sm:$0xff]  ;;  %v2712_v59 = vld [vmem:[#allocation7 + $0x48] sm:$0xff] }
  0x3a   :  { %252 = vmatprep.subr.bf16.mxu0 %v2316_v14  ;;  %v2715_v60 = vld [vmem:[#allocation7 + $0xd0] sm:$0xff]  ;;  %v2718_v61 = vld [vmem:[#allocation7 + $0x38] sm:$0xff]  ;;  %v2728_v1 = vld [vmem:[#allocation7 + $0x20] sm:$0xff] }
  0x3b   :  { %1999 = vmatpush3.bf16.msra.mxu1 %v2329_v21  ;;  %v2722_v62 = vld [vmem:[#allocation7 + $0x30] sm:$0xff]  ;;  %v2725_v63 = vld [vmem:[#allocation7 + $0xb8] sm:$0xff]  ;;  %3484 = vst [vmem:[#allocation13_spill] sm:$0xff] %v2728_v1  ;;  %v2735_v3 = vld [vmem:[#allocation7 + $0xa0] sm:$0xff]  ;;  %v99_v21 = vlaneseq }
  0x3c   :  { %2000 = vmatprep.subr.bf16.mxu1 %v3455_v0  ;;  %v2732_v2 = vld [vmem:[#allocation7 + $0x18] sm:$0xff]  ;;  %v2738_v4 = vld [vmem:[#allocation7 + $0x8] sm:$0xff]  ;;  %v2742_v5 = vld [vmem:[#allocation7] sm:$0xff] }
  0x3d   :  { %253 = vmatpush1.bf16.msra.mxu0 %v2318_v16  ;;  %3485 = vst [vmem:[#allocation14_spill] sm:$0xff] %v2732_v2  ;;  %3486 = vst [vmem:[#allocation15_spill] sm:$0xff] %v2738_v4  ;;  %v2745_v6 = vld [vmem:[#allocation7 + $0x88] sm:$0xff]  ;;  %v2751_v7 = vld [vmem:[%s3449_s1] sm:$0x1] }
  0x3e   :  { %254 = vmatprep.subr.bf16.mxu0 %v2319_v17  ;;  %3487 = vst [vmem:[#allocation16_spill] sm:$0xff] %v2742_v5  ;;  %v2756_v8 = vld [vmem:[#allocation7 + $0x70] sm:$0xff]  ;;  %v2762_v9 = vld [vmem:[#allocation7 + $0x58] sm:$0xff]  ;;  %v2768_v10 = vld [vmem:[#allocation7 + $0x40] sm:$0xff] }
  0x3f   :  { %2001 = vmatpush3.bf16.msra.mxu1 %v2330_v24  ;;  %3488 = vst [vmem:[#allocation17_spill] sm:$0xff] %v2768_v10  ;;  %v2774_v11 = vld [vmem:[#allocation7 + $0x28] sm:$0xff]  ;;  %v2780_v12 = vld [vmem:[#allocation7 + $0x10] sm:$0xff] }
  0x40   :  { %2002 = vmatprep.subr.bf16.mxu1 %v3455_v0  ;;  %3489 = vst [vmem:[#allocation18_spill] sm:$0xff] %v2774_v11  ;;  %3490 = vst [vmem:[#allocation19_spill] sm:$0xff] %v2780_v12 }
  0x41   :  { %255 = vmatpush1.bf16.msra.mxu0 %v2321_v19 }
  0x42   :  { %256 = vmatprep.subr.bf16.mxu0 %v2322_v20 }
  0x43   :  { %2003 = vmatpush3.bf16.msra.mxu1 %v2331_v28  ;;  %v371_v28 = vld [vmem:[%s3453_s5] sm:$0x7] }
  0x44   :  { %2004 = vmatprep.subr.bf16.mxu1 %v3455_v0 }
  0x45   :  { %257 = vmatpush1.bf16.msra.mxu0 %v2324_v22  ;;  %v100_v22 = vshrl.u32 %v99_v21, 7 }
  0x46   :  { %389 = vmatprep.subr.mxu0 %v2609_v23 }
  0x47   :  { %2005 = vmatpush3.bf16.msra.mxu1 %v2332_v33  ;;  %v101_v24 = vsub.s32 0, %v100_v22 }
  0x48   :  { %275 = vmatmul.mubr.bf16.vlgmr.msra.gmra.mxu0 %v64_v25  ;;  %2010 = vmatprep.subr.mxu1 %v3455_v0 }
  0x49   :  { %390 = vmatpush1.msra.mxu0 %v2613_v26  ;;  %453 = vmatprep.mubr.f32.mxu0 %v3455_v0 }
  0x4a   :  { %391 = vmatprep.subr.mxu0 %v2615_v27  ;;  %2007 = vmatmul.mubr.bf16.vlgmr.msra.gmra.mxu1 %v64_v25  ;;  %v97_v25 = vld [vmem:[%s3452_s4] sm:$0x7]  ;;  %s2557_s4 = smov [#allocation8]  }
  0x4b   :  { %392 = vmatpush1.msra.mxu0 %v2617_v29  ;;  %2011 = vmatpush3.msra.mxu1 %v2647_v39  ;;  %v102_v33 = vrot.slane %v97_v25, %v101_v24  ;;  %s1795_s5 = sshll.u32 %s2557_s4, 4  ;;  %s1796_s5 = int_to_ptr.vmem [resolvable:$true] %s1795_s5 }
  0x4c   :  { %393 = vmatprep.subr.mxu0 %v2621_v30  ;;  %2012 = vmatprep.subr.mxu1 %v3455_v0  ;;  %s2521_s18 = scalar_lea.vmem %s1796_s5, 128  ;;  %p2526_p2 = scmp.lt.s32.totalorder %s1796_s5, %s1796_s5 }
  0x4d   :  { %394 = vmatpush1.msra.mxu0 %v2625_v31  ;;  %2013 = vmatpush3.msra.mxu1 %v2655_v42  ;;  %p2522_p1 = scmp.ne.s32.totalorder %s1796_s5, %s2521_s18  ;;  %p2527_p3 = scmp.lt.s32.totalorder %s2521_s18, %s2521_s18 }
  0x4e   :  { %395 = vmatprep.subr.mxu0 %v2628_v32  ;;  %2014 = vmatprep.subr.mxu1 %v3455_v0 }
  0x4f   :  { %396 = vmatpush1.msra.mxu0 %v2631_v34  ;;  %2015 = vmatpush3.msra.mxu1 %v2665_v45  ;;  %p2528_p4 = por %p2527_p3, %p2526_p2 }
  0x50   :  { %397 = vmatprep.subr.mxu0 %v2635_v35  ;;  %2016 = vmatprep.subr.mxu1 %v3455_v0 }
  0x51   :  { %398 = vmatpush1.msra.mxu0 %v2638_v36  ;;  %2017 = vmatpush3.msra.mxu1 %v2675_v48  ;;  %p2529_p5 = pnand %p2528_p4, %p2522_p1 }
  0x52   :  { %399 = vmatprep.subr.mxu0 %v2641_v37  ;;  %2018 = vmatprep.subr.mxu1 %v3455_v0 }
  0x53   :  { %400 = vmatpush1.msra.mxu0 %v2644_v38  ;;  %2019 = vmatpush3.msra.mxu1 %v2685_v51 }
  0x54   :  { %401 = vmatprep.subr.mxu0 %v2650_v40  ;;  %2020 = vmatprep.subr.mxu1 %v3455_v0 }
  0x55   :  { %402 = vmatpush1.msra.mxu0 %v2653_v41  ;;  %2021 = vmatpush3.msra.mxu1 %v2695_v54 }
  0x56   :  { %403 = vmatprep.subr.mxu0 %v2658_v43  ;;  %2022 = vmatprep.subr.mxu1 %v3455_v0 }
  0x57   :  { %404 = vmatpush1.msra.mxu0 %v2662_v44  ;;  %2023 = vmatpush3.msra.mxu1 %v2705_v57 }
  0x58   :  { %405 = vmatprep.subr.mxu0 %v2668_v46  ;;  %2024 = vmatprep.subr.mxu1 %v3455_v0 }
  0x59   :  { %406 = vmatpush1.msra.mxu0 %v2672_v47  ;;  %2025 = vmatpush3.msra.mxu1 %v2715_v60 }
  0x5a   :  { %407 = vmatprep.subr.mxu0 %v2678_v49  ;;  %2026 = vmatprep.subr.mxu1 %v3455_v0 }
  0x5b   :  { %408 = vmatpush1.msra.mxu0 %v2682_v50  ;;  %2027 = vmatpush3.msra.mxu1 %v2725_v63 }
  0x5c   :  { %409 = vmatprep.subr.mxu0 %v2688_v52  ;;  %2028 = vmatprep.subr.mxu1 %v3455_v0 }
  0x5d   :  { %410 = vmatpush1.msra.mxu0 %v2692_v53  ;;  %2029 = vmatpush3.msra.mxu1 %v2735_v3 }
  0x5e   :  { %411 = vmatprep.subr.mxu0 %v2698_v55  ;;  %2030 = vmatprep.subr.mxu1 %v3455_v0 }
  0x5f   :  { %412 = vmatpush1.msra.mxu0 %v2702_v56  ;;  %2031 = vmatpush3.msra.mxu1 %v2745_v6 }
  0x60   :  { %413 = vmatprep.subr.mxu0 %v2708_v58  ;;  %2032 = vmatprep.subr.mxu1 %v3455_v0 }
  0x61   :  { %414 = vmatpush1.msra.mxu0 %v2712_v59  ;;  %2033 = vmatpush3.msra.mxu1 %v2756_v8 }
  0x62   :  { %415 = vmatprep.subr.mxu0 %v2718_v61  ;;  %2042 = vmatprep.mubr.msk.f32.mxu1 %vm2556_vm0, %v3455_v0 }
  0x63   :  { %416 = vmatpush1.msra.mxu0 %v2722_v62  ;;  %2034 = vmatprep.subr.mxu1 %v3455_v0 }
  0x64   :  { %417 = vmatprep.subr.mxu0 %v2728_v1  ;;  %2035 = vmatpush3.msra.mxu1 %v2762_v9 }
  0x65   :  { %418 = vmatpush1.msra.mxu0 %v2732_v2  ;;  %2036 = vmatprep.subr.mxu1 %v3455_v0 }
  0x66   :  { %419 = vmatprep.subr.mxu0 %v2738_v4  ;;  %2037 = vmatpush3.msra.mxu1 %v2768_v10 }
  0x67   :  { %420 = vmatpush1.msra.mxu0 %v2742_v5  ;;  %2038 = vmatprep.subr.mxu1 %v3455_v0 }
  0x68   :  { %454 = vmatmul.mubr.f32.vlgmr.msra.gmra.mxu0 %v2751_v7  ;;  %552 = vmatprep.subr.mxu0 %v2609_v23 }
  0x69   :  { %553 = vmatpush1.msra.mxu0 %v2613_v26  ;;  %2039 = vmatpush3.msra.mxu1 %v2774_v11 }
  0x6a   :  { %554 = vmatprep.subr.mxu0 %v2615_v27  ;;  %2040 = vmatprep.subr.mxu1 %v3455_v0 }
  0x6b   :  { %555 = vmatpush1.msra.mxu0 %v2617_v29  ;;  %2041 = vmatpush3.msra.mxu1 %v2780_v12 }
  0x6c   :  { %556 = vmatprep.subr.mxu0 %v2621_v30  ;;  %2043 = vmatmul.mubr.f32.vlgmr.msra.gmra.mxu1 %v2751_v7 }
  0x6d   :  { %557 = vmatpush1.msra.mxu0 %v2625_v31  ;;  %2045 = vmatprep.subr.mxu1 %v3455_v0 }
  0x6e   :  { %558 = vmatprep.subr.mxu0 %v2628_v32  ;;  %2046 = vmatpush3.msra.mxu1 %v2647_v39 }
  0x6f   :  { %559 = vmatpush1.msra.mxu0 %v2631_v34  ;;  %2047 = vmatprep.subr.mxu1 %v3455_v0 }
  0x70   :  { %560 = vmatprep.subr.mxu0 %v2635_v35  ;;  %2048 = vmatpush3.msra.mxu1 %v2655_v42 }
  0x71   :  { %561 = vmatpush1.msra.mxu0 %v2638_v36  ;;  %2049 = vmatprep.subr.mxu1 %v3455_v0 }
  0x72   :  { %562 = vmatprep.subr.mxu0 %v2641_v37  ;;  %2050 = vmatpush3.msra.mxu1 %v2665_v45 }
  0x73   :  { %563 = vmatpush1.msra.mxu0 %v2644_v38  ;;  %2051 = vmatprep.subr.mxu1 %v3455_v0 }
  0x74   :  { %564 = vmatprep.subr.mxu0 %v2650_v40  ;;  %2052 = vmatpush3.msra.mxu1 %v2675_v48 }
  0x75   :  { %565 = vmatpush1.msra.mxu0 %v2653_v41  ;;  %2053 = vmatprep.subr.mxu1 %v3455_v0 }
  0x76   :  { %566 = vmatprep.subr.mxu0 %v2658_v43  ;;  %2054 = vmatpush3.msra.mxu1 %v2685_v51 }
  0x77   :  { %567 = vmatpush1.msra.mxu0 %v2662_v44  ;;  %2055 = vmatprep.subr.mxu1 %v3455_v0 }
  0x78   :  { %568 = vmatprep.subr.mxu0 %v2668_v46  ;;  %2056 = vmatpush3.msra.mxu1 %v2695_v54 }
  0x79   :  { %569 = vmatpush1.msra.mxu0 %v2672_v47  ;;  %2057 = vmatprep.subr.mxu1 %v3455_v0 }
  0x7a   :  { %570 = vmatprep.subr.mxu0 %v2678_v49  ;;  %2058 = vmatpush3.msra.mxu1 %v2705_v57 }
  0x7b   :  { %571 = vmatpush1.msra.mxu0 %v2682_v50  ;;  %2059 = vmatprep.subr.mxu1 %v3455_v0 }
  0x7c   :  { %572 = vmatprep.subr.mxu0 %v2688_v52  ;;  %2060 = vmatpush3.msra.mxu1 %v2715_v60 }
  0x7d   :  { %573 = vmatpush1.msra.mxu0 %v2692_v53  ;;  %2061 = vmatprep.subr.mxu1 %v3455_v0 }
  0x7e   :  { %574 = vmatprep.subr.mxu0 %v2698_v55  ;;  %2062 = vmatpush3.msra.mxu1 %v2725_v63 }
  0x7f   :  { %575 = vmatpush1.msra.mxu0 %v2702_v56  ;;  %2063 = vmatprep.subr.mxu1 %v3455_v0 }
  0x80   :  { %576 = vmatprep.subr.mxu0 %v2708_v58  ;;  %2064 = vmatpush3.msra.mxu1 %v2735_v3 }
  0x81   :  { %577 = vmatpush1.msra.mxu0 %v2712_v59  ;;  %2065 = vmatprep.subr.mxu1 %v3455_v0 }
  0x82   :  { %578 = vmatprep.subr.mxu0 %v2718_v61  ;;  %2066 = vmatpush3.msra.mxu1 %v2745_v6 }
  0x83   :  { %579 = vmatpush1.msra.mxu0 %v2722_v62  ;;  %2067 = vmatprep.subr.mxu1 %v3455_v0 }
  0x84   :  { %580 = vmatprep.subr.mxu0 %v2728_v1  ;;  %2068 = vmatpush3.msra.mxu1 %v2756_v8 }
  0x85   :  { %581 = vmatpush1.msra.mxu0 %v2732_v2  ;;  %2069 = vmatprep.subr.mxu1 %v3455_v0 }
  0x86   :  { %582 = vmatprep.subr.mxu0 %v2738_v4  ;;  %2070 = vmatpush3.msra.mxu1 %v2762_v9 }
  0x87   :  { %583 = vmatpush1.msra.mxu0 %v2742_v5  ;;  %616 = vmatprep.mubr.f32.mxu0 %v3455_v0 }
  0x88   :  { %2071 = vmatprep.subr.mxu1 %v3455_v0  ;;  %2077 = vmatprep.mubr.msk.f32.mxu1 %vm2556_vm0, %v3455_v0 }
  0x89   :  { %2072 = vmatpush3.msra.mxu1 %v2768_v10  ;;  %730 = vmatprep.subr.mxu0 %v2609_v23 }
  0x8a   :  { %2073 = vmatprep.subr.mxu1 %v3455_v0 }
  0x8b   :  { %2074 = vmatpush3.msra.mxu1 %v2774_v11 }
  0x8c   :  { %2075 = vmatprep.subr.mxu1 %v3455_v0 }
  0x8d   :  { %2076 = vmatpush3.msra.mxu1 %v2780_v12 }
  0x8e   :  { %2080 = vmatprep.subr.mxu1 %v3455_v0  ;;  %v2857_v0 = vrot.slane %v371_v28, %v101_v24 }
  0x90   :  { %3491 = vst [vmem:[#allocation20_spill] sm:$0xff] %v2857_v0 }
 0x108   :  { %v276_v13 = vpop.f32.mrf.mxu0 }
 0x109   :  { %v2859_v23 = vadd.f32 %v276_v13, %v102_v33 }
 0x10a   :  { %v278_v14 = vpop.f32.mrf.mxu0  ;;  %v317_v17 = vpop.f32.mrf.mxu1 }
 0x10c   :  { %v280_v15 = vpop.f32.mrf.mxu0  ;;  %v2008_v18 = vpop.f32.mrf.mxu1 }
 0x10d   :  { %v105_v15 = vsub.s32 1, %v100_v22 }
 0x10e   :  { %v281_v16 = vpop.f32.mrf.mxu0  ;;  %v320_v19 = vpop.f32.mrf.mxu1 }
 0x10f   :  { %v2861_v18 = vrot.slane %v371_v28, %v105_v15  ;;  %v106_v21 = vrot.slane %v97_v25, %v105_v15 }
 0x110   :  { %v2009_v20 = vpop.f32.mrf.mxu1 }
 0x111   :  { %v2866_v11 = vadd.f32 %v278_v14, %v106_v21 }
 0x128   :  { %v455_v16 = vpop.f32.mrf.mxu0 }
 0x129   :  { %v456_v19 = vadd.f32 %v455_v16, %v2857_v0  ;;  %v109_v16 = vsub.s32 2, %v100_v22 }
 0x12a   :  { %v457_v20 = vpop.f32.mrf.mxu0 }
 0x12b   :  { %v530_v12 = vadd.f32 %v456_v19, %v2859_v23  ;;  %v458_v4 = vadd.f32 %v457_v20, %v2861_v18  ;;  %v2869_v0 = vrot.slane %v371_v28, %v109_v16  ;;  %v110_v19 = vrot.slane %v97_v25, %v109_v16  ;;  %v3495_v25 = vld [vmem:[#allocation14_spill] sm:$0xff]  ;;  %v3497_v16 = vld [vmem:[#allocation15_spill] sm:$0xff] }
 0x12c   :  { %v526_v2 = vpop.f32.mrf.mxu1 }
 0x12d   :  { %v1829_v5 = vmul.f32 -1.442695, %v530_v12  ;;  %v537_v24 = vadd.f32 %v458_v4, %v2866_v11  ;;  %v527_v20 = vadd.f32 %v526_v2, %v2869_v0  ;;  %v2872_v21 = vadd.f32 %v317_v17, %v110_v19  ;;  %v3494_v17 = vld [vmem:[#allocation13_spill] sm:$0xff]  ;;  %v3499_v19 = vld [vmem:[#allocation19_spill] sm:$0xff] }
 0x12e   :  { %v2044_v1 = vpop.f32.mrf.mxu1  ;;  %v3492_v2 = vmov 0.0  }
 0x12f   :  { %2333 = vpow2.f32 %v1829_v5  ;;  %v1830_v13 = vmul.f32 -1.442695, %v537_v24 }
 0x131   :  { %2335 = vpow2.f32 %v1830_v13 }
 0x13c   :  { %v2334_v33 = vpop.eup %2333 }
 0x13d   :  { %v534_v10 = vadd.f32 1.0, %v2334_v33  ;;  %v3496_v33 = vld [vmem:[#allocation18_spill] sm:$0xff] }
 0x13e   :  { %v2336_v15 = vpop.eup %2335 }
 0x13f   :  { %2337 = vrcp.f32 %v534_v10  ;;  %v541_v12 = vadd.f32 1.0, %v2336_v15  ;;  %v3498_v15 = vld [vmem:[#allocation16_spill] sm:$0xff] }
 0x141   :  { %2339 = vrcp.f32 %v541_v12  ;;  %v3500_v12 = vld [vmem:[#allocation12_spill] sm:$0xff] }
 0x14c   :  { %v2338_v14 = vpop.eup %2337 }
 0x14d   :  { %v544_v4 = vmul.f32 %v2338_v14, %v527_v20 }
 0x14e   :  { %v2340_v5 = vpop.eup %2339 }
 0x14f   :  { %v545_v1 = vadd.f32 %v544_v4, %v2872_v21  ;;  %v547_v24 = vsub.f32 1.0, %v2340_v5  ;;  %v549_v22 = vmul.f32 %v2340_v5, %v2751_v7  ;;  %v3493_v7 = vld [vmem:[#allocation17_spill] sm:$0xff]  ;;  %v3501_v4 = vld [vmem:[#allocation20_spill] sm:$0xff] }
 0x151   :  { %2341 = vtanh.f32 %v545_v1 }
 0x15e   :  { %v2342_v13 = vpop.eup %2341 }
 0x15f   :  { %v548_v10 = vmul.f32 %v2342_v13, %v547_v24 }
 0x161   :  { %v2876_v28 = vadd.f32 %v549_v22, %v548_v10 }
 0x163   :  { %551 = vst [vmem:[#allocation8] sm:$0x1] %v2876_v28  ;;  %617 = vmatmul.mubr.f32.vlgmr.msra.gmra.mxu0 %v2876_v28  ;;  %2078 = vmatmul.mubr.f32.vlgmr.msra.gmra.mxu1 %v2876_v28 }
 0x164   :  { %731 = vmatpush1.msra.mxu0 %v2613_v26  ;;  %2081 = vmatpush3.msra.mxu1 %v2647_v39 }
 0x165   :  { %732 = vmatprep.subr.mxu0 %v2615_v27  ;;  %2082 = vmatprep.subr.mxu1 %v3492_v2 }
 0x166   :  { %733 = vmatpush1.msra.mxu0 %v2617_v29  ;;  %2083 = vmatpush3.msra.mxu1 %v2655_v42 }
 0x167   :  { %734 = vmatprep.subr.mxu0 %v2621_v30  ;;  %2084 = vmatprep.subr.mxu1 %v3492_v2 }
 0x168   :  { %735 = vmatpush1.msra.mxu0 %v2625_v31  ;;  %2085 = vmatpush3.msra.mxu1 %v2665_v45 }
 0x169   :  { %736 = vmatprep.subr.mxu0 %v2628_v32  ;;  %2086 = vmatprep.subr.mxu1 %v3492_v2 }
 0x16a   :  { %737 = vmatpush1.msra.mxu0 %v2631_v34  ;;  %2087 = vmatpush3.msra.mxu1 %v2675_v48 }
 0x16b   :  { %738 = vmatprep.subr.mxu0 %v2635_v35  ;;  %2088 = vmatprep.subr.mxu1 %v3492_v2 }
 0x16c   :  { %739 = vmatpush1.msra.mxu0 %v2638_v36  ;;  %2089 = vmatpush3.msra.mxu1 %v2685_v51 }
 0x16d   :  { %740 = vmatprep.subr.mxu0 %v2641_v37  ;;  %2090 = vmatprep.subr.mxu1 %v3492_v2 }
 0x16e   :  { %741 = vmatpush1.msra.mxu0 %v2644_v38  ;;  %2091 = vmatpush3.msra.mxu1 %v2695_v54 }
 0x16f   :  { %742 = vmatprep.subr.mxu0 %v2650_v40  ;;  %2092 = vmatprep.subr.mxu1 %v3492_v2 }
 0x170   :  { %743 = vmatpush1.msra.mxu0 %v2653_v41  ;;  %2093 = vmatpush3.msra.mxu1 %v2705_v57 }
 0x171   :  { %744 = vmatprep.subr.mxu0 %v2658_v43  ;;  %2094 = vmatprep.subr.mxu1 %v3492_v2 }
 0x172   :  { %745 = vmatpush1.msra.mxu0 %v2662_v44  ;;  %2095 = vmatpush3.msra.mxu1 %v2715_v60 }
 0x173   :  { %746 = vmatprep.subr.mxu0 %v2668_v46  ;;  %2096 = vmatprep.subr.mxu1 %v3492_v2 }
 0x174   :  { %747 = vmatpush1.msra.mxu0 %v2672_v47  ;;  %2097 = vmatpush3.msra.mxu1 %v2725_v63 }
 0x175   :  { %748 = vmatprep.subr.mxu0 %v2678_v49  ;;  %2098 = vmatprep.subr.mxu1 %v3492_v2 }
 0x176   :  { %749 = vmatpush1.msra.mxu0 %v2682_v50  ;;  %2099 = vmatpush3.msra.mxu1 %v2735_v3 }
 0x177   :  { %750 = vmatprep.subr.mxu0 %v2688_v52  ;;  %2100 = vmatprep.subr.mxu1 %v3492_v2 }
 0x178   :  { %751 = vmatpush1.msra.mxu0 %v2692_v53  ;;  %2101 = vmatpush3.msra.mxu1 %v2745_v6 }
 0x179   :  { %752 = vmatprep.subr.mxu0 %v2698_v55  ;;  %2102 = vmatprep.subr.mxu1 %v3492_v2 }
 0x17a   :  { %753 = vmatpush1.msra.mxu0 %v2702_v56  ;;  %2103 = vmatpush3.msra.mxu1 %v2756_v8 }
 0x17b   :  { %754 = vmatprep.subr.mxu0 %v2708_v58  ;;  %2104 = vmatprep.subr.mxu1 %v3492_v2 }
 0x17c   :  { %755 = vmatpush1.msra.mxu0 %v2712_v59  ;;  %2105 = vmatpush3.msra.mxu1 %v2762_v9 }
 0x17d   :  { %756 = vmatprep.subr.mxu0 %v2718_v61  ;;  %2106 = vmatprep.subr.mxu1 %v3492_v2 }
 0x17e   :  { %757 = vmatpush1.msra.mxu0 %v2722_v62  ;;  %2107 = vmatpush3.msra.mxu1 %v3493_v7 }
 0x17f   :  { %758 = vmatprep.subr.mxu0 %v3494_v17  ;;  %2108 = vmatprep.subr.mxu1 %v3492_v2 }
 0x180   :  { %759 = vmatpush1.msra.mxu0 %v3495_v25  ;;  %2109 = vmatpush3.msra.mxu1 %v3496_v33 }
 0x181   :  { %760 = vmatprep.subr.mxu0 %v3497_v16  ;;  %2110 = vmatprep.subr.mxu1 %v3492_v2 }
 0x182   :  { %761 = vmatpush1.msra.mxu0 %v3498_v15  ;;  %794 = vmatprep.mubr.f32.mxu0 %v3492_v2 }
 0x183   :  { %2111 = vmatpush3.msra.mxu1 %v3499_v19  ;;  %2112 = vmatprep.mubr.msk.f32.mxu1 %vm2556_vm0, %v3492_v2 }
 0x184   :  { %907 = vmatprep.subr.mxu0 %v3500_v12  ;;  %2115 = vmatprep.subr.mxu1 %v3492_v2 }
 0x223   :  { %v618_v20 = vpop.f32.mrf.mxu0  ;;  %v689_v14 = vpop.f32.mrf.mxu1 }
 0x224   :  { %v619_v1 = vadd.f32 %v618_v20, %v3501_v4  ;;  %v690_v20 = vadd.f32 %v689_v14, %v2869_v0  ;;  %v3505_v14 = vld [vmem:[#allocation18_spill] sm:$0xff] }
 0x225   :  { %v620_v5 = vpop.f32.mrf.mxu0  ;;  %v2079_v24 = vpop.f32.mrf.mxu1 }
 0x226   :  { %v694_v13 = vrot.slane %v619_v1, 7  ;;  %v621_v10 = vadd.f32 %v620_v5, %v2861_v18  ;;  %v714_v24 = vrot.slane %v690_v20, 7  ;;  %v3508_v20 = vld [vmem:[#allocation19_spill] sm:$0xff] }
 0x228   :  { %v696_v22 = vadd.f32 %v694_v13, %v2859_v23  ;;  %v704_v19 = vrot.slane %v621_v10, 7 }
 0x22a   :  { %v1831_v15 = vmul.f32 -1.442695, %v696_v22  ;;  %v706_v16 = vadd.f32 %v704_v19, %v2866_v11  ;;  %v3507_v22 = vld [vmem:[#allocation16_spill] sm:$0xff] }
 0x22c   :  { %2343 = vpow2.f32 %v1831_v15  ;;  %v1832_v33 = vmul.f32 -1.442695, %v706_v16  ;;  %v722_v15 = vrot.slane %v2876_v28, 7  ;;  %v3502_v28 = vld [vmem:[#allocation17_spill] sm:$0xff] }
 0x22e   :  { %2345 = vpow2.f32 %v1832_v33 }
 0x239   :  { %v2344_v12 = vpop.eup %2343 }
 0x23a   :  { %v700_v25 = vadd.f32 1.0, %v2344_v12 }
 0x23b   :  { %v2346_v17 = vpop.eup %2345 }
 0x23c   :  { %2347 = vrcp.f32 %v700_v25  ;;  %v710_v4 = vadd.f32 1.0, %v2346_v17  ;;  %v3504_v25 = vld [vmem:[#allocation14_spill] sm:$0xff] }
 0x23e   :  { %2349 = vrcp.f32 %v710_v4  ;;  %v3506_v4 = vld [vmem:[#allocation15_spill] sm:$0xff] }
 0x249   :  { %v2348_v1 = vpop.eup %2347 }
 0x24a   :  { %v716_v7 = vmul.f32 %v2348_v1, %v714_v24  ;;  %v3509_v24 = vld [vmem:[#allocation12_spill] sm:$0xff] }
 0x24b   :  { %v2350_v13 = vpop.eup %2349 }
 0x24c   :  { %v717_v5 = vadd.f32 %v716_v7, %v2872_v21  ;;  %v719_v19 = vsub.f32 1.0, %v2350_v13  ;;  %v724_v10 = vmul.f32 %v2350_v13, %v722_v15  ;;  %v3503_v7 = vld [vmem:[#allocation13_spill] sm:$0xff]  ;;  %v3510_v13 = vld [vmem:[#allocation20_spill] sm:$0xff] }
 0x24e   :  { %2351 = vtanh.f32 %v717_v5 }
 0x25b   :  { %v2352_v16 = vpop.eup %2351 }
 0x25c   :  { %v720_v33 = vmul.f32 %v2352_v16, %v719_v19 }
 0x25e   :  { %v2955_v12 = vadd.f32 %v724_v10, %v720_v33 }
 0x260   :  { %726 = vst [vmem:[#allocation8] sm:$0x2] %v2955_v12  ;;  %v728_v17 = vrot.slane %v2955_v12, 1 }
 0x262   :  { %795 = vmatmul.mubr.f32.vlgmr.msra.gmra.mxu0 %v728_v17  ;;  %2113 = vmatmul.mubr.f32.vlgmr.msra.gmra.mxu1 %v728_v17 }
 0x263   :  { %908 = vmatpush1.msra.mxu0 %v2613_v26  ;;  %2116 = vmatpush3.msra.mxu1 %v2647_v39 }
 0x264   :  { %909 = vmatprep.subr.mxu0 %v2615_v27  ;;  %2117 = vmatprep.subr.mxu1 %v3492_v2 }
 0x265   :  { %910 = vmatpush1.msra.mxu0 %v2617_v29  ;;  %2118 = vmatpush3.msra.mxu1 %v2655_v42 }
 0x266   :  { %911 = vmatprep.subr.mxu0 %v2621_v30  ;;  %2119 = vmatprep.subr.mxu1 %v3492_v2 }
 0x267   :  { %912 = vmatpush1.msra.mxu0 %v2625_v31  ;;  %2120 = vmatpush3.msra.mxu1 %v2665_v45 }
 0x268   :  { %913 = vmatprep.subr.mxu0 %v2628_v32  ;;  %2121 = vmatprep.subr.mxu1 %v3492_v2 }
 0x269   :  { %914 = vmatpush1.msra.mxu0 %v2631_v34  ;;  %2122 = vmatpush3.msra.mxu1 %v2675_v48 }
 0x26a   :  { %915 = vmatprep.subr.mxu0 %v2635_v35  ;;  %2123 = vmatprep.subr.mxu1 %v3492_v2 }
 0x26b   :  { %916 = vmatpush1.msra.mxu0 %v2638_v36  ;;  %2124 = vmatpush3.msra.mxu1 %v2685_v51 }
 0x26c   :  { %917 = vmatprep.subr.mxu0 %v2641_v37  ;;  %2125 = vmatprep.subr.mxu1 %v3492_v2 }
 0x26d   :  { %918 = vmatpush1.msra.mxu0 %v2644_v38  ;;  %2126 = vmatpush3.msra.mxu1 %v2695_v54 }
 0x26e   :  { %919 = vmatprep.subr.mxu0 %v2650_v40  ;;  %2127 = vmatprep.subr.mxu1 %v3492_v2 }
 0x26f   :  { %920 = vmatpush1.msra.mxu0 %v2653_v41  ;;  %2128 = vmatpush3.msra.mxu1 %v2705_v57 }
 0x270   :  { %921 = vmatprep.subr.mxu0 %v2658_v43  ;;  %2129 = vmatprep.subr.mxu1 %v3492_v2 }
 0x271   :  { %922 = vmatpush1.msra.mxu0 %v2662_v44  ;;  %2130 = vmatpush3.msra.mxu1 %v2715_v60 }
 0x272   :  { %923 = vmatprep.subr.mxu0 %v2668_v46  ;;  %2131 = vmatprep.subr.mxu1 %v3492_v2 }
 0x273   :  { %924 = vmatpush1.msra.mxu0 %v2672_v47  ;;  %2132 = vmatpush3.msra.mxu1 %v2725_v63 }
 0x274   :  { %925 = vmatprep.subr.mxu0 %v2678_v49  ;;  %2133 = vmatprep.subr.mxu1 %v3492_v2 }
 0x275   :  { %926 = vmatpush1.msra.mxu0 %v2682_v50  ;;  %2134 = vmatpush3.msra.mxu1 %v2735_v3 }
 0x276   :  { %927 = vmatprep.subr.mxu0 %v2688_v52  ;;  %2135 = vmatprep.subr.mxu1 %v3492_v2 }
 0x277   :  { %928 = vmatpush1.msra.mxu0 %v2692_v53  ;;  %2136 = vmatpush3.msra.mxu1 %v2745_v6 }
 0x278   :  { %929 = vmatprep.subr.mxu0 %v2698_v55  ;;  %2137 = vmatprep.subr.mxu1 %v3492_v2 }
 0x279   :  { %930 = vmatpush1.msra.mxu0 %v2702_v56  ;;  %2138 = vmatpush3.msra.mxu1 %v2756_v8 }
 0x27a   :  { %931 = vmatprep.subr.mxu0 %v2708_v58  ;;  %2139 = vmatprep.subr.mxu1 %v3492_v2 }
 0x27b   :  { %932 = vmatpush1.msra.mxu0 %v2712_v59  ;;  %2140 = vmatpush3.msra.mxu1 %v2762_v9 }
 0x27c   :  { %933 = vmatprep.subr.mxu0 %v2718_v61  ;;  %2141 = vmatprep.subr.mxu1 %v3492_v2 }
 0x27d   :  { %934 = vmatpush1.msra.mxu0 %v2722_v62  ;;  %2142 = vmatpush3.msra.mxu1 %v3502_v28 }
 0x27e   :  { %935 = vmatprep.subr.mxu0 %v3503_v7  ;;  %2143 = vmatprep.subr.mxu1 %v3492_v2 }
 0x27f   :  { %936 = vmatpush1.msra.mxu0 %v3504_v25  ;;  %2144 = vmatpush3.msra.mxu1 %v3505_v14 }
 0x280   :  { %937 = vmatprep.subr.mxu0 %v3506_v4  ;;  %2145 = vmatprep.subr.mxu1 %v3492_v2 }
 0x281   :  { %938 = vmatpush1.msra.mxu0 %v3507_v22  ;;  %971 = vmatprep.mubr.f32.mxu0 %v3492_v2 }
 0x282   :  { %2146 = vmatpush3.msra.mxu1 %v3508_v20  ;;  %2147 = vmatprep.mubr.msk.f32.mxu1 %vm2556_vm0, %v3492_v2 }
 0x283   :  { %1084 = vmatprep.subr.mxu0 %v3509_v24  ;;  %2150 = vmatprep.subr.mxu1 %v3492_v2 }
 0x322   :  { %v796_v1 = vpop.f32.mrf.mxu0  ;;  %v867_v5 = vpop.f32.mrf.mxu1 }
 0x323   :  { %v797_v15 = vadd.f32 %v796_v1, %v3510_v13  ;;  %v868_v1 = vadd.f32 %v867_v5, %v2869_v0 }
 0x324   :  { %v798_v19 = vpop.f32.mrf.mxu0  ;;  %v2114_v16 = vpop.f32.mrf.mxu1 }
 0x325   :  { %v872_v33 = vrot.slane %v797_v15, 6  ;;  %v799_v10 = vadd.f32 %v798_v19, %v2861_v18  ;;  %v892_v16 = vrot.slane %v868_v1, 6  ;;  %v3123_v1 = vld [vmem:[#allocation7 + $0x158] sm:$0xff] }
 0x327   :  { %v874_v17 = vadd.f32 %v872_v33, %v2859_v23  ;;  %v882_v20 = vrot.slane %v799_v10, 6 }
 0x329   :  { %v1833_v22 = vmul.f32 -1.442695, %v874_v17  ;;  %v884_v4 = vadd.f32 %v882_v20, %v2866_v11  ;;  %v899_v20 = vrot.slane %v2955_v12, 7 }
 0x32b   :  { %2353 = vpow2.f32 %v1833_v22  ;;  %v1834_v14 = vmul.f32 -1.442695, %v884_v4 }
 0x32d   :  { %2355 = vpow2.f32 %v1834_v14 }
 0x338   :  { %v2354_v24 = vpop.eup %2353 }
 0x339   :  { %v878_v25 = vadd.f32 1.0, %v2354_v24  ;;  %v3120_v24 = vld [vmem:[#allocation7 + $0x178] sm:$0xff] }
 0x33a   :  { %v2356_v7 = vpop.eup %2355 }
 0x33b   :  { %2357 = vrcp.f32 %v878_v25  ;;  %v888_v13 = vadd.f32 1.0, %v2356_v7 }
 0x33d   :  { %2359 = vrcp.f32 %v888_v13  ;;  %v3117_v13 = vld [vmem:[#allocation7 + $0x168] sm:$0xff] }
 0x348   :  { %v2358_v15 = vpop.eup %2357 }
 0x349   :  { %v894_v28 = vmul.f32 %v2358_v15, %v892_v16  ;;  %v3127_v16 = vld [vmem:[#allocation7 + $0x150] sm:$0xff]  ;;  %v3130_v15 = vld [vmem:[#allocation7 + $0x160] sm:$0xff] }
 0x34a   :  { %v2360_v33 = vpop.eup %2359 }
 0x34b   :  { %v895_v19 = vadd.f32 %v894_v28, %v2872_v21  ;;  %v897_v22 = vsub.f32 1.0, %v2360_v33  ;;  %v901_v10 = vmul.f32 %v2360_v33, %v899_v20  ;;  %v3137_v33 = vld [vmem:[#allocation7 + $0x138] sm:$0xff]  ;;  %v3143_v20 = vld [vmem:[#allocation7 + $0x128] sm:$0xff] }
 0x34d   :  { %2361 = vtanh.f32 %v895_v19  ;;  %v3133_v19 = vld [vmem:[#allocation7 + $0x140] sm:$0xff] }
 0x35a   :  { %v2362_v4 = vpop.eup %2361 }
 0x35b   :  { %v898_v14 = vmul.f32 %v2362_v4, %v897_v22  ;;  %v3140_v22 = vld [vmem:[#allocation7 + $0x148] sm:$0xff]  ;;  %v3147_v4 = vld [vmem:[#allocation7 + $0x120] sm:$0xff] }
 0x35d   :  { %v3033_v17 = vadd.f32 %v901_v10, %v898_v14  ;;  %v3150_v14 = vld [vmem:[#allocation7 + $0x130] sm:$0xff] }
 0x35e   :  { %v3153_v10 = vld [vmem:[#allocation7 + $0x110] sm:$0xff] }
 0x35f   :  { %903 = vst [vmem:[#allocation8] sm:$0x4] %v3033_v17  ;;  %v905_v7 = vrot.slane %v3033_v17, 2 }
 0x361   :  { %972 = vmatmul.mubr.f32.vlgmr.msra.gmra.mxu0 %v905_v7  ;;  %2148 = vmatmul.mubr.f32.vlgmr.msra.gmra.mxu1 %v905_v7  ;;  %v3160_v7 = vld [vmem:[#allocation7 + $0x118] sm:$0xff] }
 0x362   :  { %1085 = vmatpush1.msra.mxu0 %v2613_v26  ;;  %2151 = vmatpush3.msra.mxu1 %v2647_v39  ;;  %v3511_v26 = vld [vmem:[#allocation17_spill] sm:$0xff] }
 0x363   :  { %1086 = vmatprep.subr.mxu0 %v2615_v27  ;;  %2152 = vmatprep.subr.mxu1 %v3492_v2  ;;  %v3512_v27 = vld [vmem:[#allocation13_spill] sm:$0xff] }
 0x364   :  { %1087 = vmatpush1.msra.mxu0 %v2617_v29  ;;  %2153 = vmatpush3.msra.mxu1 %v2655_v42  ;;  %v3513_v29 = vld [vmem:[#allocation14_spill] sm:$0xff] }
 0x365   :  { %1088 = vmatprep.subr.mxu0 %v2621_v30  ;;  %2154 = vmatprep.subr.mxu1 %v3492_v2  ;;  %v3514_v30 = vld [vmem:[#allocation18_spill] sm:$0xff] }
 0x366   :  { %1089 = vmatpush1.msra.mxu0 %v2625_v31  ;;  %2155 = vmatpush3.msra.mxu1 %v2665_v45  ;;  %v3515_v31 = vld [vmem:[#allocation15_spill] sm:$0xff] }
 0x367   :  { %1090 = vmatprep.subr.mxu0 %v2628_v32  ;;  %2156 = vmatprep.subr.mxu1 %v3492_v2  ;;  %v3516_v32 = vld [vmem:[#allocation16_spill] sm:$0xff] }
 0x368   :  { %1091 = vmatpush1.msra.mxu0 %v2631_v34  ;;  %2157 = vmatpush3.msra.mxu1 %v2675_v48  ;;  %v3517_v34 = vld [vmem:[#allocation19_spill] sm:$0xff] }
 0x369   :  { %1092 = vmatprep.subr.mxu0 %v2635_v35  ;;  %2158 = vmatprep.subr.mxu1 %v3492_v2  ;;  %v3102_v35 = vld [vmem:[#allocation7 + $0x170] sm:$0xff] }
 0x36a   :  { %1093 = vmatpush1.msra.mxu0 %v2638_v36  ;;  %2159 = vmatpush3.msra.mxu1 %v2685_v51 }
 0x36b   :  { %1094 = vmatprep.subr.mxu0 %v2641_v37  ;;  %2160 = vmatprep.subr.mxu1 %v3492_v2 }
 0x36c   :  { %1095 = vmatpush1.msra.mxu0 %v2644_v38  ;;  %2161 = vmatpush3.msra.mxu1 %v2695_v54  ;;  %v3518_v38 = vld [vmem:[#allocation20_spill] sm:$0xff] }
 0x36d   :  { %1096 = vmatprep.subr.mxu0 %v2650_v40  ;;  %2162 = vmatprep.subr.mxu1 %v3492_v2 }
 0x36e   :  { %1097 = vmatpush1.msra.mxu0 %v2653_v41  ;;  %2163 = vmatpush3.msra.mxu1 %v2705_v57 }
 0x36f   :  { %1098 = vmatprep.subr.mxu0 %v2658_v43  ;;  %2164 = vmatprep.subr.mxu1 %v3492_v2 }
 0x370   :  { %1099 = vmatpush1.msra.mxu0 %v2662_v44  ;;  %2165 = vmatpush3.msra.mxu1 %v2715_v60 }
 0x371   :  { %1100 = vmatprep.subr.mxu0 %v2668_v46  ;;  %2166 = vmatprep.subr.mxu1 %v3492_v2 }
 0x372   :  { %1101 = vmatpush1.msra.mxu0 %v2672_v47  ;;  %2167 = vmatpush3.msra.mxu1 %v2725_v63 }
 0x373   :  { %1102 = vmatprep.subr.mxu0 %v2678_v49  ;;  %2168 = vmatprep.subr.mxu1 %v3492_v2 }
 0x374   :  { %1103 = vmatpush1.msra.mxu0 %v2682_v50  ;;  %2169 = vmatpush3.msra.mxu1 %v2735_v3 }
 0x375   :  { %1104 = vmatprep.subr.mxu0 %v2688_v52  ;;  %2170 = vmatprep.subr.mxu1 %v3492_v2 }
 0x376   :  { %1105 = vmatpush1.msra.mxu0 %v2692_v53  ;;  %2171 = vmatpush3.msra.mxu1 %v2745_v6 }
 0x377   :  { %1106 = vmatprep.subr.mxu0 %v2698_v55  ;;  %2172 = vmatprep.subr.mxu1 %v3492_v2 }
 0x378   :  { %1107 = vmatpush1.msra.mxu0 %v2702_v56  ;;  %2173 = vmatpush3.msra.mxu1 %v2756_v8 }
 0x379   :  { %1108 = vmatprep.subr.mxu0 %v2708_v58  ;;  %2174 = vmatprep.subr.mxu1 %v3492_v2 }
 0x37a   :  { %1109 = vmatpush1.msra.mxu0 %v2712_v59  ;;  %2175 = vmatpush3.msra.mxu1 %v2762_v9 }
 0x37b   :  { %1110 = vmatprep.subr.mxu0 %v2718_v61  ;;  %2176 = vmatprep.subr.mxu1 %v3492_v2  ;;  %v1076_v61 = vrot.slane %v3033_v17, 7  ;;  %v3157_v17 = vld [vmem:[#allocation7 + $0x108] sm:$0xff] }
 0x37c   :  { %1111 = vmatpush1.msra.mxu0 %v2722_v62  ;;  %2177 = vmatpush3.msra.mxu1 %v3511_v26 }
 0x37d   :  { %1112 = vmatprep.subr.mxu0 %v3512_v27  ;;  %2178 = vmatprep.subr.mxu1 %v3492_v2  ;;  %v3163_v27 = vld [vmem:[#allocation7 + $0xf8] sm:$0xff] }
 0x37e   :  { %1113 = vmatpush1.msra.mxu0 %v3513_v29  ;;  %2179 = vmatpush3.msra.mxu1 %v3514_v30  ;;  %v3167_v29 = vld [vmem:[#allocation7 + $0xf0] sm:$0xff] }
 0x37f   :  { %1114 = vmatprep.subr.mxu0 %v3515_v31  ;;  %2180 = vmatprep.subr.mxu1 %v3492_v2  ;;  %v3170_v31 = vld [vmem:[#allocation7 + $0x100] sm:$0xff] }
 0x380   :  { %1115 = vmatpush1.msra.mxu0 %v3516_v32  ;;  %1148 = vmatprep.mubr.f32.mxu0 %v3492_v2  ;;  %v3173_v32 = vld [vmem:[#allocation7 + $0xe0] sm:$0xff] }
 0x381   :  { %2181 = vmatpush3.msra.mxu1 %v3517_v34  ;;  %2182 = vmatprep.mubr.msk.f32.mxu1 %vm2556_vm0, %v3492_v2 }
 0x382   :  { %1261 = vmatprep.subr.mxu0 %v3102_v35  ;;  %2185 = vmatprep.subr.mxu1 %v3492_v2 }
 0x421   :  { %v973_v36 = vpop.f32.mrf.mxu0  ;;  %v1044_v37 = vpop.f32.mrf.mxu1 }
 0x422   :  { %v974_v39 = vadd.f32 %v973_v36, %v3518_v38  ;;  %v1045_v52 = vadd.f32 %v1044_v37, %v2869_v0  ;;  %v3177_v36 = vld [vmem:[#allocation7 + $0xd8] sm:$0xff]  ;;  %v3180_v37 = vld [vmem:[#allocation7 + $0xe8] sm:$0xff] }
 0x423   :  { %v975_v40 = vpop.f32.mrf.mxu0  ;;  %v2149_v41 = vpop.f32.mrf.mxu1 }
 0x424   :  { %v1049_v42 = vrot.slane %v974_v39, 5  ;;  %v976_v43 = vadd.f32 %v975_v40, %v2861_v18  ;;  %v1069_v54 = vrot.slane %v1045_v52, 5  ;;  %v3183_v39 = vld [vmem:[#allocation7 + $0xc8] sm:$0xff]  ;;  %v3187_v40 = vld [vmem:[#allocation7 + $0xc0] sm:$0xff]  ;;  %v3191_v41 = vld [vmem:[#allocation7 + $0xb0] sm:$0xff] }
 0x426   :  { %v1051_v44 = vadd.f32 %v1049_v42, %v2859_v23  ;;  %v1059_v46 = vrot.slane %v976_v43, 5  ;;  %v3195_v42 = vld [vmem:[#allocation7 + $0xa8] sm:$0xff]  ;;  %v3199_v43 = vld [vmem:[#allocation7 + $0x98] sm:$0xff] }
 0x428   :  { %v1835_v45 = vmul.f32 -1.442695, %v1051_v44  ;;  %v1061_v47 = vadd.f32 %v1059_v46, %v2866_v11  ;;  %v3203_v44 = vld [vmem:[#allocation7 + $0x90] sm:$0xff]  ;;  %v3219_v46 = vld [vmem:[#allocation7 + $0x60] sm:$0xff] }
 0x42a   :  { %2363 = vpow2.f32 %v1835_v45  ;;  %v1836_v48 = vmul.f32 -1.442695, %v1061_v47  ;;  %v3211_v45 = vld [vmem:[#allocation7 + $0x78] sm:$0xff]  ;;  %v3227_v47 = vld [vmem:[#allocation7 + $0x48] sm:$0xff] }
 0x42c   :  { %2365 = vpow2.f32 %v1836_v48  ;;  %v3235_v48 = vld [vmem:[#allocation7 + $0x30] sm:$0xff] }
 0x437   :  { %v2364_v49 = vpop.eup %2363 }
 0x438   :  { %v1055_v50 = vadd.f32 1.0, %v2364_v49  ;;  %v3243_v49 = vld [vmem:[#allocation7 + $0x18] sm:$0xff] }
 0x439   :  { %v2366_v51 = vpop.eup %2365  ;;  %3520 = vst [vmem:[#allocation17_spill] sm:$0xff] %v3243_v49 }
 0x43a   :  { %2367 = vrcp.f32 %v1055_v50  ;;  %v1065_v53 = vadd.f32 1.0, %v2366_v51  ;;  %v3251_v50 = vld [vmem:[#allocation7] sm:$0xff] }
 0x43b   :  { %3522 = vst [vmem:[#allocation14_spill] sm:$0xff] %v3251_v50 }
 0x43c   :  { %2369 = vrcp.f32 %v1065_v53 }
 0x447   :  { %v2368_v55 = vpop.eup %2367 }
 0x448   :  { %v1071_v56 = vmul.f32 %v2368_v55, %v1069_v54 }
 0x449   :  { %v2370_v58 = vpop.eup %2369 }
 0x44a   :  { %v1072_v57 = vadd.f32 %v1071_v56, %v2872_v21  ;;  %v1074_v59 = vsub.f32 1.0, %v2370_v58  ;;  %v1078_v28 = vmul.f32 %v2370_v58, %v1076_v61 }
 0x44c   :  { %2371 = vtanh.f32 %v1072_v57 }
 0x459   :  { %v2372_v62 = vpop.eup %2371 }
 0x45a   :  { %v1075_v12 = vmul.f32 %v2372_v62, %v1074_v59 }
 0x45c   :  { %v3113_v25 = vadd.f32 %v1078_v28, %v1075_v12 }
 0x45e   :  { %1080 = vst [vmem:[#allocation8] sm:$0x8] %v3113_v25  ;;  %v1082_v5 = vrot.slane %v3113_v25, 3 }
 0x460   :  { %1149 = vmatmul.mubr.f32.vlgmr.msra.gmra.mxu0 %v1082_v5  ;;  %2183 = vmatmul.mubr.f32.vlgmr.msra.gmra.mxu1 %v1082_v5 }
 0x461   :  { %1262 = vmatpush1.msra.mxu0 %v3117_v13  ;;  %2186 = vmatpush3.msra.mxu1 %v3120_v24 }
 0x462   :  { %1263 = vmatprep.subr.mxu0 %v3123_v1  ;;  %2187 = vmatprep.subr.mxu1 %v3492_v2 }
 0x463   :  { %1264 = vmatpush1.msra.mxu0 %v3127_v16  ;;  %2188 = vmatpush3.msra.mxu1 %v3130_v15 }
 0x464   :  { %1265 = vmatprep.subr.mxu0 %v3133_v19  ;;  %2189 = vmatprep.subr.mxu1 %v3492_v2 }
 0x465   :  { %1266 = vmatpush1.msra.mxu0 %v3137_v33  ;;  %2190 = vmatpush3.msra.mxu1 %v3140_v22 }
 0x466   :  { %1267 = vmatprep.subr.mxu0 %v3143_v20  ;;  %2191 = vmatprep.subr.mxu1 %v3492_v2 }
 0x467   :  { %1268 = vmatpush1.msra.mxu0 %v3147_v4  ;;  %2192 = vmatpush3.msra.mxu1 %v3150_v14 }
 0x468   :  { %1269 = vmatprep.subr.mxu0 %v3153_v10  ;;  %2193 = vmatprep.subr.mxu1 %v3492_v2 }
 0x469   :  { %1270 = vmatpush1.msra.mxu0 %v3157_v17  ;;  %2194 = vmatpush3.msra.mxu1 %v3160_v7 }
 0x46a   :  { %1271 = vmatprep.subr.mxu0 %v3163_v27  ;;  %2195 = vmatprep.subr.mxu1 %v3492_v2 }
 0x46b   :  { %1272 = vmatpush1.msra.mxu0 %v3167_v29  ;;  %2196 = vmatpush3.msra.mxu1 %v3170_v31 }
 0x46c   :  { %1273 = vmatprep.subr.mxu0 %v3173_v32  ;;  %2197 = vmatprep.subr.mxu1 %v3492_v2 }
 0x46d   :  { %1274 = vmatpush1.msra.mxu0 %v3177_v36  ;;  %2198 = vmatpush3.msra.mxu1 %v3180_v37 }
 0x46e   :  { %1275 = vmatprep.subr.mxu0 %v3183_v39  ;;  %2199 = vmatprep.subr.mxu1 %v3492_v2 }
 0x46f   :  { %1276 = vmatpush1.msra.mxu0 %v3187_v40  ;;  %2200 = vmatpush3.msra.mxu1 %v2715_v60  ;;  %v3207_v60 = vld [vmem:[#allocation7 + $0x80] sm:$0xff] }
 0x470   :  { %1277 = vmatprep.subr.mxu0 %v3191_v41  ;;  %2201 = vmatprep.subr.mxu1 %v3492_v2 }
 0x471   :  { %1278 = vmatpush1.msra.mxu0 %v3195_v42  ;;  %2202 = vmatpush3.msra.mxu1 %v2725_v63  ;;  %v3215_v63 = vld [vmem:[#allocation7 + $0x68] sm:$0xff] }
 0x472   :  { %1279 = vmatprep.subr.mxu0 %v3199_v43  ;;  %2203 = vmatprep.subr.mxu1 %v3492_v2 }
 0x473   :  { %1280 = vmatpush1.msra.mxu0 %v3203_v44  ;;  %2204 = vmatpush3.msra.mxu1 %v2735_v3  ;;  %v3223_v3 = vld [vmem:[#allocation7 + $0x50] sm:$0xff] }
 0x474   :  { %1281 = vmatprep.subr.mxu0 %v3207_v60  ;;  %2205 = vmatprep.subr.mxu1 %v3492_v2 }
 0x475   :  { %1282 = vmatpush1.msra.mxu0 %v3211_v45  ;;  %2206 = vmatpush3.msra.mxu1 %v2745_v6  ;;  %v3231_v6 = vld [vmem:[#allocation7 + $0x38] sm:$0xff] }
 0x476   :  { %1283 = vmatprep.subr.mxu0 %v3215_v63  ;;  %2207 = vmatprep.subr.mxu1 %v3492_v2 }
 0x477   :  { %1284 = vmatpush1.msra.mxu0 %v3219_v46  ;;  %2208 = vmatpush3.msra.mxu1 %v2756_v8  ;;  %v3239_v8 = vld [vmem:[#allocation7 + $0x20] sm:$0xff] }
 0x478   :  { %1285 = vmatprep.subr.mxu0 %v3223_v3  ;;  %2209 = vmatprep.subr.mxu1 %v3492_v2  ;;  %3519 = vst [vmem:[#allocation12_spill] sm:$0xff] %v3239_v8 }
 0x479   :  { %1286 = vmatpush1.msra.mxu0 %v3227_v47  ;;  %2210 = vmatpush3.msra.mxu1 %v2762_v9  ;;  %v3247_v9 = vld [vmem:[#allocation7 + $0x8] sm:$0xff] }
 0x47a   :  { %1287 = vmatprep.subr.mxu0 %v3231_v6  ;;  %2211 = vmatprep.subr.mxu1 %v3492_v2  ;;  %3521 = vst [vmem:[#allocation13_spill] sm:$0xff] %v3247_v9 }
 0x47b   :  { %1288 = vmatpush1.msra.mxu0 %v3235_v48  ;;  %2212 = vmatpush3.msra.mxu1 %v3511_v26 }
 0x47c   :  { %1289 = vmatprep.subr.mxu0 %v3239_v8  ;;  %2213 = vmatprep.subr.mxu1 %v3492_v2 }
 0x47d   :  { %1290 = vmatpush1.msra.mxu0 %v3243_v49  ;;  %2214 = vmatpush3.msra.mxu1 %v3514_v30 }
 0x47e   :  { %1291 = vmatprep.subr.mxu0 %v3247_v9  ;;  %2215 = vmatprep.subr.mxu1 %v3492_v2 }
 0x47f   :  { %1292 = vmatpush1.msra.mxu0 %v3251_v50  ;;  %1325 = vmatprep.mubr.f32.mxu0 %v3492_v2 }
 0x480   :  { %2216 = vmatpush3.msra.mxu1 %v3517_v34  ;;  %2217 = vmatprep.mubr.msk.f32.mxu1 %vm2556_vm0, %v3492_v2 }
 0x481   :  { %1438 = vmatprep.subr.mxu0 %v3102_v35  ;;  %2220 = vmatprep.subr.mxu1 %v3492_v2 }
 0x520   :  { %v1150_v26 = vpop.f32.mrf.mxu0  ;;  %v1221_v30 = vpop.f32.mrf.mxu1 }
 0x521   :  { %v1151_v51 = vadd.f32 %v1150_v26, %v3518_v38  ;;  %v1222_v28 = vadd.f32 %v1221_v30, %v2869_v0 }
 0x522   :  { %v1152_v52 = vpop.f32.mrf.mxu0  ;;  %v2184_v53 = vpop.f32.mrf.mxu1 }
 0x523   :  { %v1226_v54 = vrot.slane %v1151_v51, 4  ;;  %v1153_v55 = vadd.f32 %v1152_v52, %v2861_v18  ;;  %v1246_v26 = vrot.slane %v1222_v28, 4  ;;  %v3324_v28 = vld [vmem:[#allocation7 + $0x70] sm:$0xff] }
 0x525   :  { %v1228_v56 = vadd.f32 %v1226_v54, %v2859_v23  ;;  %v1236_v34 = vrot.slane %v1153_v55, 4 }
 0x527   :  { %v1837_v57 = vmul.f32 -1.442695, %v1228_v56  ;;  %v1238_v58 = vadd.f32 %v1236_v34, %v2866_v11  ;;  %v1253_v56 = vrot.slane %v3113_v25, 7  ;;  %v3300_v25 = vld [vmem:[#allocation7 + $0xd0] sm:$0xff] }
 0x529   :  { %2373 = vpow2.f32 %v1837_v57  ;;  %v1838_v59 = vmul.f32 -1.442695, %v1238_v58 }
 0x52b   :  { %2375 = vpow2.f32 %v1838_v59 }
 0x536   :  { %v2374_v61 = vpop.eup %2373 }
 0x537   :  { %v1232_v62 = vadd.f32 1.0, %v2374_v61  ;;  %v3306_v61 = vld [vmem:[#allocation7 + $0xb8] sm:$0xff] }
 0x538   :  { %v2376_v12 = vpop.eup %2375 }
 0x539   :  { %2377 = vrcp.f32 %v1232_v62  ;;  %v1242_v5 = vadd.f32 1.0, %v2376_v12  ;;  %v3312_v62 = vld [vmem:[#allocation7 + $0xa0] sm:$0xff]  ;;  %v3318_v12 = vld [vmem:[#allocation7 + $0x88] sm:$0xff] }
 0x53b   :  { %2379 = vrcp.f32 %v1242_v5  ;;  %v3330_v5 = vld [vmem:[#allocation7 + $0x58] sm:$0xff] }
 0x546   :  { %v2378_v51 = vpop.eup %2377 }
 0x547   :  { %v1248_v53 = vmul.f32 %v2378_v51, %v1246_v26  ;;  %v3336_v26 = vld [vmem:[#allocation7 + $0x40] sm:$0xff]  ;;  %v3342_v51 = vld [vmem:[#allocation7 + $0x28] sm:$0xff] }
 0x548   :  { %v2380_v54 = vpop.eup %2379  ;;  %3523 = vst [vmem:[#allocation18_spill] sm:$0xff] %v3336_v26  ;;  %3524 = vst [vmem:[#allocation15_spill] sm:$0xff] %v3342_v51 }
 0x549   :  { %v1249_v52 = vadd.f32 %v1248_v53, %v2872_v21  ;;  %v1251_v55 = vsub.f32 1.0, %v2380_v54  ;;  %v1255_v58 = vmul.f32 %v2380_v54, %v1253_v56  ;;  %v3349_v53 = vld [vmem:[#allocation7 + $0x10] sm:$0xff] }
 0x54a   :  { %3525 = vst [vmem:[#allocation16_spill] sm:$0xff] %v3349_v53 }
 0x54b   :  { %2381 = vtanh.f32 %v1249_v52 }
 0x558   :  { %v2382_v57 = vpop.eup %2381 }
 0x559   :  { %v1252_v34 = vmul.f32 %v2382_v57, %v1251_v55 }
 0x55b   :  { %v3267_v59 = vadd.f32 %v1255_v58, %v1252_v34 }
 0x55d   :  { %1257 = vst [vmem:[#allocation8] sm:$0x10] %v3267_v59  ;;  %v1259_v30 = vrot.slane %v3267_v59, 4 }
 0x55f   :  { %1326 = vmatmul.mubr.f32.vlgmr.msra.gmra.mxu0 %v1259_v30  ;;  %2218 = vmatmul.mubr.f32.vlgmr.msra.gmra.mxu1 %v1259_v30 }
 0x560   :  { %1439 = vmatpush1.msra.mxu0 %v3117_v13  ;;  %2221 = vmatpush3.msra.mxu1 %v3120_v24 }
 0x561   :  { %1440 = vmatprep.subr.mxu0 %v3123_v1  ;;  %2222 = vmatprep.subr.mxu1 %v3492_v2 }
 0x562   :  { %1441 = vmatpush1.msra.mxu0 %v3127_v16  ;;  %2223 = vmatpush3.msra.mxu1 %v3130_v15 }
 0x563   :  { %1442 = vmatprep.subr.mxu0 %v3133_v19  ;;  %2224 = vmatprep.subr.mxu1 %v3492_v2 }
 0x564   :  { %1443 = vmatpush1.msra.mxu0 %v3137_v33  ;;  %2225 = vmatpush3.msra.mxu1 %v3140_v22 }
 0x565   :  { %1444 = vmatprep.subr.mxu0 %v3143_v20  ;;  %2226 = vmatprep.subr.mxu1 %v3492_v2 }
 0x566   :  { %1445 = vmatpush1.msra.mxu0 %v3147_v4  ;;  %2227 = vmatpush3.msra.mxu1 %v3150_v14 }
 0x567   :  { %1446 = vmatprep.subr.mxu0 %v3153_v10  ;;  %2228 = vmatprep.subr.mxu1 %v3492_v2 }
 0x568   :  { %1447 = vmatpush1.msra.mxu0 %v3157_v17  ;;  %2229 = vmatpush3.msra.mxu1 %v3160_v7 }
 0x569   :  { %1448 = vmatprep.subr.mxu0 %v3163_v27  ;;  %2230 = vmatprep.subr.mxu1 %v3492_v2 }
 0x56a   :  { %1449 = vmatpush1.msra.mxu0 %v3167_v29  ;;  %2231 = vmatpush3.msra.mxu1 %v3170_v31 }
 0x56b   :  { %1450 = vmatprep.subr.mxu0 %v3173_v32  ;;  %2232 = vmatprep.subr.mxu1 %v3492_v2 }
 0x56c   :  { %1451 = vmatpush1.msra.mxu0 %v3177_v36  ;;  %2233 = vmatpush3.msra.mxu1 %v3180_v37 }
 0x56d   :  { %1452 = vmatprep.subr.mxu0 %v3183_v39  ;;  %2234 = vmatprep.subr.mxu1 %v3492_v2 }
 0x56e   :  { %1453 = vmatpush1.msra.mxu0 %v3187_v40  ;;  %2235 = vmatpush3.msra.mxu1 %v3300_v25 }
 0x56f   :  { %1454 = vmatprep.subr.mxu0 %v3191_v41  ;;  %2236 = vmatprep.subr.mxu1 %v3492_v2 }
 0x570   :  { %1455 = vmatpush1.msra.mxu0 %v3195_v42  ;;  %2237 = vmatpush3.msra.mxu1 %v3306_v61 }
 0x571   :  { %1456 = vmatprep.subr.mxu0 %v3199_v43  ;;  %2238 = vmatprep.subr.mxu1 %v3492_v2 }
 0x572   :  { %1457 = vmatpush1.msra.mxu0 %v3203_v44  ;;  %2239 = vmatpush3.msra.mxu1 %v3312_v62 }
 0x573   :  { %1458 = vmatprep.subr.mxu0 %v3207_v60  ;;  %2240 = vmatprep.subr.mxu1 %v3492_v2 }
 0x574   :  { %1459 = vmatpush1.msra.mxu0 %v3211_v45  ;;  %2241 = vmatpush3.msra.mxu1 %v3318_v12 }
 0x575   :  { %1460 = vmatprep.subr.mxu0 %v3215_v63  ;;  %2242 = vmatprep.subr.mxu1 %v3492_v2 }
 0x576   :  { %1461 = vmatpush1.msra.mxu0 %v3219_v46  ;;  %2243 = vmatpush3.msra.mxu1 %v3324_v28 }
 0x577   :  { %1462 = vmatprep.subr.mxu0 %v3223_v3  ;;  %2244 = vmatprep.subr.mxu1 %v3492_v2 }
 0x578   :  { %1463 = vmatpush1.msra.mxu0 %v3227_v47  ;;  %2245 = vmatpush3.msra.mxu1 %v3330_v5 }
 0x579   :  { %1464 = vmatprep.subr.mxu0 %v3231_v6  ;;  %2246 = vmatprep.subr.mxu1 %v3492_v2 }
 0x57a   :  { %1465 = vmatpush1.msra.mxu0 %v3235_v48  ;;  %2247 = vmatpush3.msra.mxu1 %v3336_v26 }
 0x57b   :  { %1466 = vmatprep.subr.mxu0 %v3239_v8  ;;  %2248 = vmatprep.subr.mxu1 %v3492_v2 }
 0x57c   :  { %1467 = vmatpush1.msra.mxu0 %v3243_v49  ;;  %2249 = vmatpush3.msra.mxu1 %v3342_v51 }
 0x57d   :  { %1468 = vmatprep.subr.mxu0 %v3247_v9  ;;  %2250 = vmatprep.subr.mxu1 %v3492_v2 }
 0x57e   :  { %1469 = vmatpush1.msra.mxu0 %v3251_v50  ;;  %1502 = vmatprep.mubr.f32.mxu0 %v3492_v2 }
 0x57f   :  { %2251 = vmatpush3.msra.mxu1 %v3349_v53  ;;  %2252 = vmatprep.mubr.msk.f32.mxu1 %vm2556_vm0, %v3492_v2 }
 0x580   :  { %1615 = vmatprep.subr.mxu0 %v3102_v35  ;;  %2255 = vmatprep.subr.mxu1 %v3492_v2 }
 0x61f   :  { %v1327_v52 = vpop.f32.mrf.mxu0  ;;  %v1398_v54 = vpop.f32.mrf.mxu1 }
 0x620   :  { %v1328_v55 = vadd.f32 %v1327_v52, %v3518_v38  ;;  %v1399_v52 = vadd.f32 %v1398_v54, %v2869_v0 }
 0x621   :  { %v1329_v56 = vpop.f32.mrf.mxu0  ;;  %v2219_v57 = vpop.f32.mrf.mxu1 }
 0x622   :  { %v1403_v34 = vrot.slane %v1328_v55, 3  ;;  %v1330_v58 = vadd.f32 %v1329_v56, %v2861_v18  ;;  %v1423_v57 = vrot.slane %v1399_v52, 3 }
 0x624   :  { %v1405_v30 = vadd.f32 %v1403_v34, %v2859_v23  ;;  %v1413_v53 = vrot.slane %v1330_v58, 3 }
 0x626   :  { %v1839_v50 = vmul.f32 -1.442695, %v1405_v30  ;;  %v1415_v9 = vadd.f32 %v1413_v53, %v2866_v11  ;;  %v1430_v53 = vrot.slane %v3267_v59, 7 }
 0x628   :  { %2383 = vpow2.f32 %v1839_v50  ;;  %v1840_v51 = vmul.f32 -1.442695, %v1415_v9 }
 0x62a   :  { %2385 = vpow2.f32 %v1840_v51 }
 0x635   :  { %v2384_v35 = vpop.eup %2383 }
 0x636   :  { %v1409_v49 = vadd.f32 1.0, %v2384_v35 }
 0x637   :  { %v2386_v8 = vpop.eup %2385 }
 0x638   :  { %2387 = vrcp.f32 %v1409_v49  ;;  %v1419_v38 = vadd.f32 1.0, %v2386_v8 }
 0x63a   :  { %2389 = vrcp.f32 %v1419_v38  ;;  %v3526_v38 = vld [vmem:[#allocation18_spill] sm:$0xff] }
 0x645   :  { %v2388_v55 = vpop.eup %2387 }
 0x646   :  { %v1425_v26 = vmul.f32 %v2388_v55, %v1423_v57 }
 0x647   :  { %v2390_v34 = vpop.eup %2389 }
 0x648   :  { %v1426_v56 = vadd.f32 %v1425_v26, %v2872_v21  ;;  %v1428_v50 = vsub.f32 1.0, %v2390_v34  ;;  %v1432_v58 = vmul.f32 %v2390_v34, %v1430_v53 }
 0x64a   :  { %2391 = vtanh.f32 %v1426_v56 }
 0x657   :  { %v2392_v9 = vpop.eup %2391 }
 0x658   :  { %v1429_v51 = vmul.f32 %v2392_v9, %v1428_v50 }
 0x65a   :  { %v3363_v30 = vadd.f32 %v1432_v58, %v1429_v51 }
 0x65c   :  { %1434 = vst [vmem:[#allocation8] sm:$0x20] %v3363_v30  ;;  %v1436_v8 = vrot.slane %v3363_v30, 5 }
 0x65e   :  { %1503 = vmatmul.mubr.f32.vlgmr.msra.gmra.mxu0 %v1436_v8  ;;  %2253 = vmatmul.mubr.f32.vlgmr.msra.gmra.mxu1 %v1436_v8 }
 0x65f   :  { %1616 = vmatpush1.msra.mxu0 %v3117_v13  ;;  %2256 = vmatpush3.msra.mxu1 %v3120_v24  ;;  %v3527_v13 = vld [vmem:[#allocation12_spill] sm:$0xff]  ;;  %v3528_v24 = vld [vmem:[#allocation17_spill] sm:$0xff] }
 0x660   :  { %1617 = vmatprep.subr.mxu0 %v3123_v1  ;;  %2257 = vmatprep.subr.mxu1 %v3492_v2  ;;  %v3529_v1 = vld [vmem:[#allocation15_spill] sm:$0xff] }
 0x661   :  { %1618 = vmatpush1.msra.mxu0 %v3127_v16  ;;  %2258 = vmatpush3.msra.mxu1 %v3130_v15  ;;  %v3530_v16 = vld [vmem:[#allocation13_spill] sm:$0xff]  ;;  %v3531_v15 = vld [vmem:[#allocation14_spill] sm:$0xff] }
 0x662   :  { %1619 = vmatprep.subr.mxu0 %v3133_v19  ;;  %2259 = vmatprep.subr.mxu1 %v3492_v2  ;;  %v3532_v19 = vld [vmem:[#allocation16_spill] sm:$0xff] }
 0x663   :  { %1620 = vmatpush1.msra.mxu0 %v3137_v33  ;;  %2260 = vmatpush3.msra.mxu1 %v3140_v22 }
 0x664   :  { %1621 = vmatprep.subr.mxu0 %v3143_v20  ;;  %2261 = vmatprep.subr.mxu1 %v3492_v2  ;;  %v3533_v20 = vld [vmem:[#allocation20_spill] sm:$0xff] }
 0x665   :  { %1622 = vmatpush1.msra.mxu0 %v3147_v4  ;;  %2262 = vmatpush3.msra.mxu1 %v3150_v14 }
 0x666   :  { %1623 = vmatprep.subr.mxu0 %v3153_v10  ;;  %2263 = vmatprep.subr.mxu1 %v3492_v2 }
 0x667   :  { %1624 = vmatpush1.msra.mxu0 %v3157_v17  ;;  %2264 = vmatpush3.msra.mxu1 %v3160_v7 }
 0x668   :  { %1625 = vmatprep.subr.mxu0 %v3163_v27  ;;  %2265 = vmatprep.subr.mxu1 %v3492_v2 }
 0x669   :  { %1626 = vmatpush1.msra.mxu0 %v3167_v29  ;;  %2266 = vmatpush3.msra.mxu1 %v3170_v31 }
 0x66a   :  { %1627 = vmatprep.subr.mxu0 %v3173_v32  ;;  %2267 = vmatprep.subr.mxu1 %v3492_v2 }
 0x66b   :  { %1628 = vmatpush1.msra.mxu0 %v3177_v36  ;;  %2268 = vmatpush3.msra.mxu1 %v3180_v37 }
 0x66c   :  { %1629 = vmatprep.subr.mxu0 %v3183_v39  ;;  %2269 = vmatprep.subr.mxu1 %v3492_v2 }
 0x66d   :  { %1630 = vmatpush1.msra.mxu0 %v3187_v40  ;;  %2270 = vmatpush3.msra.mxu1 %v3300_v25 }
 0x66e   :  { %1631 = vmatprep.subr.mxu0 %v3191_v41  ;;  %2271 = vmatprep.subr.mxu1 %v3492_v2 }
 0x66f   :  { %1632 = vmatpush1.msra.mxu0 %v3195_v42  ;;  %2272 = vmatpush3.msra.mxu1 %v3306_v61 }
 0x670   :  { %1633 = vmatprep.subr.mxu0 %v3199_v43  ;;  %2273 = vmatprep.subr.mxu1 %v3492_v2 }
 0x671   :  { %1634 = vmatpush1.msra.mxu0 %v3203_v44  ;;  %2274 = vmatpush3.msra.mxu1 %v3312_v62 }
 0x672   :  { %1635 = vmatprep.subr.mxu0 %v3207_v60  ;;  %2275 = vmatprep.subr.mxu1 %v3492_v2 }
 0x673   :  { %1636 = vmatpush1.msra.mxu0 %v3211_v45  ;;  %2276 = vmatpush3.msra.mxu1 %v3318_v12 }
 0x674   :  { %1637 = vmatprep.subr.mxu0 %v3215_v63  ;;  %2277 = vmatprep.subr.mxu1 %v3492_v2 }
 0x675   :  { %1638 = vmatpush1.msra.mxu0 %v3219_v46  ;;  %2278 = vmatpush3.msra.mxu1 %v3324_v28  ;;  %v1607_v46 = vrot.slane %v3363_v30, 7 }
 0x676   :  { %1639 = vmatprep.subr.mxu0 %v3223_v3  ;;  %2279 = vmatprep.subr.mxu1 %v3492_v2 }
 0x677   :  { %1640 = vmatpush1.msra.mxu0 %v3227_v47  ;;  %2280 = vmatpush3.msra.mxu1 %v3330_v5 }
 0x678   :  { %1641 = vmatprep.subr.mxu0 %v3231_v6  ;;  %2281 = vmatprep.subr.mxu1 %v3492_v2 }
 0x679   :  { %1642 = vmatpush1.msra.mxu0 %v3235_v48  ;;  %2282 = vmatpush3.msra.mxu1 %v3526_v38 }
 0x67a   :  { %1643 = vmatprep.subr.mxu0 %v3527_v13  ;;  %2283 = vmatprep.subr.mxu1 %v3492_v2 }
 0x67b   :  { %1644 = vmatpush1.msra.mxu0 %v3528_v24  ;;  %2284 = vmatpush3.msra.mxu1 %v3529_v1 }
 0x67c   :  { %1645 = vmatprep.subr.mxu0 %v3530_v16  ;;  %2285 = vmatprep.subr.mxu1 %v3492_v2 }
 0x67d   :  { %1646 = vmatpush1.msra.mxu0 %v3531_v15  ;;  %1679 = vmatprep.mubr.f32.mxu0 %v3492_v2 }
 0x67e   :  { %2286 = vmatpush3.msra.mxu1 %v3532_v19  ;;  %2287 = vmatprep.mubr.msk.f32.mxu1 %vm2556_vm0, %v3492_v2 }
 0x71e   :  { %v1504_v33 = vpop.f32.mrf.mxu0  ;;  %v1575_v22 = vpop.f32.mrf.mxu1 }
 0x71f   :  { %v1505_v4 = vadd.f32 %v1504_v33, %v3533_v20  ;;  %v1576_v40 = vadd.f32 %v1575_v22, %v2869_v0 }
 0x720   :  { %v1506_v14 = vpop.f32.mrf.mxu0  ;;  %v2254_v10 = vpop.f32.mrf.mxu1 }
 0x721   :  { %v1580_v17 = vrot.slane %v1505_v4, 2  ;;  %v1507_v7 = vadd.f32 %v1506_v14, %v2861_v18  ;;  %v1600_v42 = vrot.slane %v1576_v40, 2 }
 0x723   :  { %v1582_v27 = vadd.f32 %v1580_v17, %v2859_v23  ;;  %v1590_v31 = vrot.slane %v1507_v7, 2 }
 0x725   :  { %v1841_v29 = vmul.f32 -1.442695, %v1582_v27  ;;  %v1592_v32 = vadd.f32 %v1590_v31, %v2866_v11 }
 0x727   :  { %2393 = vpow2.f32 %v1841_v29  ;;  %v1842_v36 = vmul.f32 -1.442695, %v1592_v32 }
 0x729   :  { %2395 = vpow2.f32 %v1842_v36 }
 0x734   :  { %v2394_v37 = vpop.eup %2393 }
 0x735   :  { %v1586_v2 = vadd.f32 1.0, %v2394_v37 }
 0x736   :  { %v2396_v39 = vpop.eup %2395 }
 0x737   :  { %2397 = vrcp.f32 %v1586_v2  ;;  %v1596_v41 = vadd.f32 1.0, %v2396_v39 }
 0x739   :  { %2399 = vrcp.f32 %v1596_v41 }
 0x744   :  { %v2398_v43 = vpop.eup %2397 }
 0x745   :  { %v1602_v44 = vmul.f32 %v2398_v43, %v1600_v42 }
 0x746   :  { %v2400_v45 = vpop.eup %2399 }
 0x747   :  { %v1603_v60 = vadd.f32 %v1602_v44, %v2872_v21  ;;  %v1605_v63 = vsub.f32 1.0, %v2400_v45  ;;  %v1609_v6 = vmul.f32 %v2400_v45, %v1607_v46 }
 0x749   :  { %2401 = vtanh.f32 %v1603_v60 }
 0x756   :  { %v2402_v3 = vpop.eup %2401 }
 0x757   :  { %v1606_v47 = vmul.f32 %v2402_v3, %v1605_v63 }
 0x759   :  { %v1610_v48 = vadd.f32 %v1609_v6, %v1606_v47 }
 0x75b   :  { %1611 = vst [vmem:[#allocation8] sm:$0x40] %v1610_v48  ;;  %v1613_v49 = vrot.slane %v1610_v48, 6  ;;  %v1784_v30 = vrot.slane %v1610_v48, 7 }
 0x75d   :  { %1680 = vmatmul.mubr.f32.vlgmr.msra.gmra.mxu0 %v1613_v49  ;;  %2288 = vmatmul.mubr.f32.vlgmr.msra.gmra.mxu1 %v1613_v49 }
 0x81d   :  { %v1681_v59 = vpop.f32.mrf.mxu0  ;;  %v1752_v25 = vpop.f32.mrf.mxu1 }
 0x81e   :  { %v1682_v61 = vadd.f32 %v1681_v59, %v3533_v20  ;;  %v1753_v50 = vadd.f32 %v1752_v25, %v2869_v0 }
 0x81f   :  { %v1683_v62 = vpop.f32.mrf.mxu0  ;;  %v2289_v12 = vpop.f32.mrf.mxu1 }
 0x820   :  { %v1757_v28 = vrot.slane %v1682_v61, 1  ;;  %v1684_v5 = vadd.f32 %v1683_v62, %v2861_v18  ;;  %v1777_v9 = vrot.slane %v1753_v50, 1 }
 0x822   :  { %v1759_v26 = vadd.f32 %v1757_v28, %v2859_v23  ;;  %v1767_v35 = vrot.slane %v1684_v5, 1 }
 0x824   :  { %v1843_v54 = vmul.f32 -1.442695, %v1759_v26  ;;  %v1769_v52 = vadd.f32 %v1767_v35, %v2866_v11 }
 0x826   :  { %2403 = vpow2.f32 %v1843_v54  ;;  %v1844_v57 = vmul.f32 -1.442695, %v1769_v52 }
 0x828   :  { %2405 = vpow2.f32 %v1844_v57 }
 0x833   :  { %v2404_v55 = vpop.eup %2403 }
 0x834   :  { %v1763_v56 = vadd.f32 1.0, %v2404_v55 }
 0x835   :  { %v2406_v34 = vpop.eup %2405 }
 0x836   :  { %2407 = vrcp.f32 %v1763_v56  ;;  %v1773_v53 = vadd.f32 1.0, %v2406_v34 }
 0x838   :  { %2409 = vrcp.f32 %v1773_v53 }
 0x843   :  { %v2408_v51 = vpop.eup %2407 }
 0x844   :  { %v1779_v58 = vmul.f32 %v2408_v51, %v1777_v9 }
 0x845   :  { %v2410_v18 = vpop.eup %2409 }
 0x846   :  { %v1780_v23 = vadd.f32 %v1779_v58, %v2872_v21  ;;  %v1782_v8 = vsub.f32 1.0, %v2410_v18  ;;  %v1786_v13 = vmul.f32 %v2410_v18, %v1784_v30 }
 0x848   :  { %2411 = vtanh.f32 %v1780_v23 }
 0x855   :  { %v2412_v11 = vpop.eup %2411 }
 0x856   :  { %v1783_v38 = vmul.f32 %v2412_v11, %v1782_v8 }
 0x858   :  { %v1787_v24 = vadd.f32 %v1786_v13, %v1783_v38 }
 0x85a   :  { %1788 = vst [vmem:[#allocation8] sm:$0x80] %v1787_v24 }
 0x85b   :  { %2532 = shalt.err (!%p2529_p5)
}
 0x85c   :  { %1798 = dma.vmem_to_hbm [thread:$0]  %s1796_s5, 128, %s3454_s6, [#allocation4]  }
 0x85d   :  { %2545 = dma.done.wait [#allocation4], 128  }
 0x85e   :  { %2546 = vsyncadd [#allocation4], 4294967168 }
 0x85f   :  { %1802 = vsyncpa [#allocation3], 1 }
 0x860   :  { %1803 = vsyncpa [#allocation6], 1 }
 0x861   :  { %1804 = vsyncpa [#allocation4], 1 }

</bundles_post_ra>
